<compile_context>
chip_gen: v7x
topology: tpu7x:2x2x1
jax: 0.10.0
libtpu: 0.0.40
codegen_flags: <defaults>
</compile_context>

<pallas_src>
import functools

import jax
import jax.numpy as jnp
import numpy as np
from jax.experimental import pallas as pl
from jax.experimental.pallas import tpu as pltpu

LANE = 128     # conv output channels are padded to a multiple of this (lane-dense stores)
SUBLANE = 8    # input-channel (matmul K) padding granularity


def _round_up(n, m):
    return (n + m - 1) // m * m


def _pad_last(x, c_to):
    c = x.shape[-1]
    if c == c_to:
        return x
    return jnp.pad(x, [(0, 0)] * (x.ndim - 1) + [(0, c_to - c)])


# ----------------------------- Pallas kernels ------------------------------

def _conv_taps_acc(x_ref, w_ref, tap_offsets, mo):
    """sum_t  x_flat[off_t : off_t + mo, :] @ w[t]   (bf16 MXU, f32 accumulate)."""
    cout = w_ref.shape[-1]
    acc = jnp.zeros((mo, cout), jnp.float32)
    for t, off in enumerate(tap_offsets):      # static, fully unrolled (<= 9 taps)
        xt = x_ref[0, off:off + mo, :]         # contiguous static slice (bf16)
        acc = acc + jnp.dot(xt, w_ref[t], preferred_element_type=jnp.float32)
    return acc


def _conv_bias_kernel(x_ref, w_ref, b_ref, o_ref, *, tap_offsets, mo, relu):
    out = _conv_taps_acc(x_ref, w_ref, tap_offsets, mo) + b_ref[...]
    if relu:
        out = jnp.maximum(out, 0.0)
    o_ref[0] = out.astype(o_ref.dtype)


def _conv_bias_add_relu_kernel(x_ref, w_ref, b_ref, r_ref, o_ref, *, tap_offsets, mo):
    # conv + folded-BN bias + residual add + final relu, all fused.
    out = _conv_taps_acc(x_ref, w_ref, tap_offsets, mo) + b_ref[...]
    out = out + r_ref[0].astype(jnp.float32)
    o_ref[0] = jnp.maximum(out, 0.0).astype(o_ref.dtype)


def conv_bn_act(x_flat, w_taps, bias, tap_offsets, mo, *, relu,
                residual=None, out_dtype=jnp.bfloat16):
    """Fused conv (as sum of tap matmuls) + BN bias [+ residual] [+ relu].

    x_flat:   (N, M_total, Cin_p)  bf16   flattened (parity-split) padded activation
    w_taps:   (T, Cin_p, Cout_p)   bf16   BN-scale-folded packed weights
    bias:     (1, Cout_p)          f32
    residual: (N, mo, Cout_p)      bf16   optional
    returns:  (N, mo, Cout_p)      out_dtype
    """
    N, m_tot, cin_p = x_flat.shape
    T, _, cout_p = w_taps.shape
    grid = (N,)
    in_specs = [
        pl.BlockSpec((1, m_tot, cin_p), lambda n: (n, 0, 0)),   # per-image activation
        pl.BlockSpec((T, cin_p, cout_p), lambda n: (0, 0, 0)),  # resident weights
        pl.BlockSpec((1, cout_p), lambda n: (0, 0)),            # folded BN bias
    ]
    out_spec = pl.BlockSpec((1, mo, cout_p), lambda n: (n, 0, 0))
    out_shape = jax.ShapeDtypeStruct((N, mo, cout_p), out_dtype)
    cp = pltpu.CompilerParams(dimension_semantics=("parallel",),
                              vmem_limit_bytes=32 * 1024 * 1024)
    if residual is None:
        kern = functools.partial(_conv_bias_kernel, tap_offsets=tuple(tap_offsets),
                                 mo=mo, relu=relu)
        args = (x_flat, w_taps, bias)
    else:
        in_specs = in_specs + [pl.BlockSpec((1, mo, cout_p), lambda n: (n, 0, 0))]
        kern = functools.partial(_conv_bias_add_relu_kernel,
                                 tap_offsets=tuple(tap_offsets), mo=mo)
        args = (x_flat, w_taps, bias, residual)
    return pl.pallas_call(kern, grid=grid, in_specs=in_specs, out_specs=out_spec,
                          out_shape=out_shape, compiler_params=cp)(*args)


# ------------------------------- JAX glue ----------------------------------

def prep_conv3x3(x_nhwc, stride, compute_dtype=jnp.bfloat16):
    """Pad + flatten an NHWC activation for the fused 3x3 conv kernel.

    Returns (x_flat, tap_offsets, mo, (Ho, Wo, Wq)).  Output row m = i*Wq + j;
    columns j in [Wo, Wq) are halo garbage and are dropped by the caller.
    """
    N, H, W, C = x_nhwc.shape
    cin_p = _round_up(C, SUBLANE)
    x = _pad_last(x_nhwc, cin_p).astype(compute_dtype)

    if stride == 1:
        Ho, Wo = H, W
        Wq = W + 2
        xp = jnp.pad(x, ((0, 0), (1, 2), (1, 1), (0, 0)))          # (H+3, W+2)
        x_flat = xp.reshape(N, (H + 3) * Wq, cin_p)
        offs = [dy * Wq + dx for dy in range(3) for dx in range(3)]
    elif stride == 2:
        Ho = (H - 1) // 2 + 1
        Wo = (W - 1) // 2 + 1
        Hq, Wq = Ho + 2, Wo + 1
        # 1 row/col of logical conv padding on top/left, enough on bottom/right
        # for an exact 2x2 parity decomposition (extra zeros are never read by
        # valid outputs).
        xp = jnp.pad(x, ((0, 0), (1, 2 * Hq - H - 1), (1, 2 * Wq - W - 1), (0, 0)))
        xp = xp.reshape(N, Hq, 2, Wq, 2, cin_p).transpose(0, 2, 4, 1, 3, 5)
        x_flat = xp.reshape(N, 4 * Hq * Wq, cin_p)
        offs = [(2 * (dy % 2) + (dx % 2)) * Hq * Wq + (dy // 2) * Wq + (dx // 2)
                for dy in range(3) for dx in range(3)]
    else:
        raise NotImplementedError(f"stride={stride}")
    return x_flat, offs, Ho * Wq, (Ho, Wo, Wq)


def prep_conv1x1(x_nhwc, stride, compute_dtype=jnp.bfloat16):
    """1x1 conv: fold the stride into a glue subsample; single tap, no halo."""
    xs = x_nhwc[:, ::stride, ::stride, :]
    N, Ho, Wo, C = xs.shape
    cin_p = _round_up(C, SUBLANE)
    xs = _pad_last(xs, cin_p).astype(compute_dtype)
    return xs.reshape(N, Ho * Wo, cin_p), [0], Ho * Wo, (Ho, Wo, Wo)


def fold_bn(gamma, beta, mean, var, eps=1e-5):
    scale = gamma / jnp.sqrt(var + eps)
    bias = beta - mean * scale
    return scale, bias


def pack_conv_weight(w_oihw, scale, cin_p, cout_p):
    """PyTorch (Cout,Cin,kh,kw) -> (kh*kw, Cin_p, Cout_p) bf16, BN scale folded."""
    cout, cin, kh, kw = w_oihw.shape
    w = jnp.transpose(w_oihw, (2, 3, 1, 0)).reshape(kh * kw, cin, cout)
    w = w * scale[None, None, :]                     # eval-mode BN: fold scale
    w = jnp.pad(w, ((0, 0), (0, cin_p - cin), (0, cout_p - cout)))
    return w.astype(jnp.bfloat16)


def _pad_bias(b, cout_p):
    return jnp.pad(b, (0, cout_p - b.shape[0])).reshape(1, cout_p).astype(jnp.float32)


def basic_block_forward(x_nchw, params, *, in_planes, planes, stride):
    x = jnp.transpose(x_nchw, (0, 2, 3, 1))          # NCHW -> NHWC
    N = x.shape[0]
    cout_p = _round_up(planes, LANE)
    cin1_p = _round_up(in_planes, SUBLANE)

    s1, b1 = fold_bn(*params["bn1"])
    s2, b2 = fold_bn(*params["bn2"])
    w1 = pack_conv_weight(params["w1"], s1, cin1_p, cout_p)
    w2 = pack_conv_weight(params["w2"], s2, cout_p, cout_p)   # conv2 input carries padded channels
    b1p = _pad_bias(b1, cout_p)
    b2p = _pad_bias(b2, cout_p)

    # conv1 (3x3, stride) + bn1 + relu  -- fused, bf16 MXU, lane-dense output
    x1_flat, offs1, mo1, (Ho, Wo, Wq1) = prep_conv3x3(x, stride)
    y1_flat = conv_bn_act(x1_flat, w1, b1p, offs1, mo1, relu=True,
                          out_dtype=jnp.bfloat16)
    y1 = y1_flat.reshape(N, Ho, Wq1, cout_p)[:, :, :Wo, :]    # drop halo columns

    # shortcut: 1x1 conv + bn (projection) or identity, kept channel-padded bf16
    if stride != 1 or in_planes != planes:
        ss, bs = fold_bn(*params["bns"])
        ws = pack_conv_weight(params["ws"], ss, cin1_p, cout_p)
        bsp = _pad_bias(bs, cout_p)
        xs_flat, offss, mos, _ = prep_conv1x1(x, stride)
        sc_flat = conv_bn_act(xs_flat, ws, bsp, offss, mos, relu=False,
                              out_dtype=jnp.bfloat16)
        sc = sc_flat.reshape(N, Ho, Wo, cout_p)
    else:
        sc = _pad_last(x, cout_p).astype(jnp.bfloat16)

    # conv2 (3x3, s=1) + bn2 + residual add + final relu -- one fused kernel
    x2_flat, offs2, mo2, (Ho2, Wo2, Wq2) = prep_conv3x3(y1, 1)
    res_flat = jnp.pad(sc, ((0, 0), (0, 0), (0, Wq2 - Wo2), (0, 0))).reshape(
        N, mo2, cout_p)
    out_flat = conv_bn_act(x2_flat, w2, b2p, offs2, mo2, relu=True,
                           residual=res_flat, out_dtype=jnp.float32)
    out = out_flat.reshape(N, Ho2, Wq2, cout_p)[:, :, :Wo2, :planes]
    return jnp.transpose(out, (0, 3, 1, 2))          # NHWC -> NCHW


# ------------------------ pure-JAX reference (check) ------------------------

def reference_forward(x, params, *, in_planes, planes, stride, eps=1e-5):
    def conv(x, w, s, pad):
        return jax.lax.conv_general_dilated(
            x, w, (s, s), [(pad, pad), (pad, pad)],
            dimension_numbers=("NCHW", "OIHW", "NCHW"))

    def bn(x, gamma, beta, mean, var):
        s = gamma / jnp.sqrt(var + eps)
        b = beta - mean * s
        return x * s[None, :, None, None] + b[None, :, None, None]

    out = jax.nn.relu(bn(conv(x, params["w1"], stride, 1), *params["bn1"]))
    out = bn(conv(out, params["w2"], 1, 1), *params["bn2"])
    if stride != 1 or in_planes != planes:
        sc = bn(conv(x, params["ws"], stride, 0), *params["bns"])
    else:
        sc = x
    return jax.nn.relu(out + sc)


# --------------------------------- main -------------------------------------

def make_params(key, in_planes, planes, stride):
    ks = jax.random.split(key, 8)

    def bn_params(k, c):
        k1, k2, k3, k4 = jax.random.split(k, 4)
        gamma = 1.0 + 0.1 * jax.random.normal(k1, (c,), jnp.float32)
        beta = 0.1 * jax.random.normal(k2, (c,), jnp.float32)
        mean = 0.1 * jax.random.normal(k3, (c,), jnp.float32)
        var = jax.random.uniform(k4, (c,), jnp.float32, 0.5, 1.5)
        return (gamma, beta, mean, var)

    params = {
        "w1": 0.1 * jax.random.normal(ks[0], (planes, in_planes, 3, 3), jnp.float32),
        "w2": 0.1 * jax.random.normal(ks[1], (planes, planes, 3, 3), jnp.float32),
        "bn1": bn_params(ks[2], planes),
        "bn2": bn_params(ks[3], planes),
    }
    if stride != 1 or in_planes != planes:
        params["ws"] = 0.1 * jax.random.normal(ks[4], (planes, in_planes, 1, 1), jnp.float32)
        params["bns"] = bn_params(ks[5], planes)
    return params


if __name__ == "__main__":
    key = jax.random.PRNGKey(0)
    configs = [
        # (N, in_planes, planes, H, W, stride)
        (2, 4, 8, 16, 16, 2),    # strided block: exercises the 1x1 projection shortcut
        (2, 8, 8, 16, 16, 1),    # identity-shortcut block, stride-1 conv1
    ]
    for (N, in_planes, planes, H, W, stride) in configs:
        key, kx, kp = jax.random.split(key, 3)
        x = jax.random.normal(kx, (N, in_planes, H, W), jnp.float32)
        params = make_params(kp, in_planes, planes, stride)

        fwd = jax.jit(functools.partial(
            basic_block_forward, in_planes=in_planes, planes=planes, stride=stride))
        out = fwd(x, params)
        jax.block_until_ready(out)

        ref = reference_forward(x, params, in_planes=in_planes,
                                planes=planes, stride=stride)
        # bf16 MXU inputs vs. f32 reference -> loose-ish tolerance.
        np.testing.assert_allclose(np.asarray(out), np.asarray(ref),
                                   rtol=5e-2, atol=5e-2)

    print("KERNEL_OK")
</pallas_src>

<mosaic_0001>
module attributes {stable_mosaic.version = 11 : i64} {
  func.func @_conv_bias_kernel(%arg0: i32, %arg1: memref<1x360x8xbf16, #tpu.memory_space<vmem>>, %arg2: memref<9x8x128xbf16, #tpu.memory_space<vmem>>, %arg3: memref<1x128xf32, #tpu.memory_space<vmem>>, %arg4: memref<1x72x128xbf16, #tpu.memory_space<vmem>>) attributes {dimension_semantics = [#tpu.dimension_semantics<parallel>], iteration_bounds = array<i64: 2>, scalar_prefetch = 0 : i64, scratch_operands = 0 : i64, tpu.core_type = #tpu.core_type<tc>, window_params = [{transform_indices = @transform_0, window_bounds = array<i64: 1, 360, 8>}, {pipeline_mode = #tpu.pipeline_mode<synchronous>, transform_indices = @transform_1, window_bounds = array<i64: 9, 8, 128>}, {pipeline_mode = #tpu.pipeline_mode<synchronous>, transform_indices = @transform_2, window_bounds = array<i64: 1, 128>}, {transform_indices = @transform_3, window_bounds = array<i64: 1, 72, 128>}]} {
    %cst = arith.constant 0.000000e+00 : f32
    %0 = vector.broadcast %cst : f32 to vector<72x128xf32>
    %c0 = arith.constant 0 : index
    %c0_0 = arith.constant 0 : index
    %c0_1 = arith.constant 0 : index
    %1 = vector.load %arg1[%c0, %c0_0, %c0_1] : memref<1x360x8xbf16, #tpu.memory_space<vmem>>, vector<1x72x8xbf16>
    %2 = vector.shape_cast %1 : vector<1x72x8xbf16> to vector<72x8xbf16>
    %c0_2 = arith.constant 0 : index
    %c0_3 = arith.constant 0 : index
    %c0_4 = arith.constant 0 : index
    %3 = vector.load %arg2[%c0_2, %c0_3, %c0_4] : memref<9x8x128xbf16, #tpu.memory_space<vmem>>, vector<1x8x128xbf16>
    %4 = vector.shape_cast %3 : vector<1x8x128xbf16> to vector<8x128xbf16>
    %cst_5 = arith.constant dense<0.000000e+00> : vector<72x128xf32>
    %5 = tpu.matmul %2, %4, %cst_5 {dimension_numbers = #tpu.dot_dimension_numbers<[1], [0], [0], [1], [0, 0, 1, 1], [], []>} : vector<72x8xbf16>, vector<8x128xbf16>, vector<72x128xf32> -> vector<72x128xf32>
    %6 = arith.addf %0, %5 : vector<72x128xf32>
    %c0_6 = arith.constant 0 : index
    %c90 = arith.constant 90 : index
    %c0_7 = arith.constant 0 : index
    %7 = vector.load %arg1[%c0_6, %c90, %c0_7] : memref<1x360x8xbf16, #tpu.memory_space<vmem>>, vector<1x72x8xbf16>
    %8 = vector.shape_cast %7 : vector<1x72x8xbf16> to vector<72x8xbf16>
    %c1 = arith.constant 1 : index
    %c0_8 = arith.constant 0 : index
    %c0_9 = arith.constant 0 : index
    %9 = vector.load %arg2[%c1, %c0_8, %c0_9] : memref<9x8x128xbf16, #tpu.memory_space<vmem>>, vector<1x8x128xbf16>
    %10 = vector.shape_cast %9 : vector<1x8x128xbf16> to vector<8x128xbf16>
    %cst_10 = arith.constant dense<0.000000e+00> : vector<72x128xf32>
    %11 = tpu.matmul %8, %10, %cst_10 {dimension_numbers = #tpu.dot_dimension_numbers<[1], [0], [0], [1], [0, 0, 1, 1], [], []>} : vector<72x8xbf16>, vector<8x128xbf16>, vector<72x128xf32> -> vector<72x128xf32>
    %12 = arith.addf %6, %11 : vector<72x128xf32>
    %c0_11 = arith.constant 0 : index
    %c1_12 = arith.constant 1 : index
    %c0_13 = arith.constant 0 : index
    %13 = vector.load %arg1[%c0_11, %c1_12, %c0_13] : memref<1x360x8xbf16, #tpu.memory_space<vmem>>, vector<1x72x8xbf16>
    %14 = vector.shape_cast %13 : vector<1x72x8xbf16> to vector<72x8xbf16>
    %c2 = arith.constant 2 : index
    %c0_14 = arith.constant 0 : index
    %c0_15 = arith.constant 0 : index
    %15 = vector.load %arg2[%c2, %c0_14, %c0_15] : memref<9x8x128xbf16, #tpu.memory_space<vmem>>, vector<1x8x128xbf16>
    %16 = vector.shape_cast %15 : vector<1x8x128xbf16> to vector<8x128xbf16>
    %cst_16 = arith.constant dense<0.000000e+00> : vector<72x128xf32>
    %17 = tpu.matmul %14, %16, %cst_16 {dimension_numbers = #tpu.dot_dimension_numbers<[1], [0], [0], [1], [0, 0, 1, 1], [], []>} : vector<72x8xbf16>, vector<8x128xbf16>, vector<72x128xf32> -> vector<72x128xf32>
    %18 = arith.addf %12, %17 : vector<72x128xf32>
    %c0_17 = arith.constant 0 : index
    %c180 = arith.constant 180 : index
    %c0_18 = arith.constant 0 : index
    %19 = vector.load %arg1[%c0_17, %c180, %c0_18] : memref<1x360x8xbf16, #tpu.memory_space<vmem>>, vector<1x72x8xbf16>
    %20 = vector.shape_cast %19 : vector<1x72x8xbf16> to vector<72x8xbf16>
    %c3 = arith.constant 3 : index
    %c0_19 = arith.constant 0 : index
    %c0_20 = arith.constant 0 : index
    %21 = vector.load %arg2[%c3, %c0_19, %c0_20] : memref<9x8x128xbf16, #tpu.memory_space<vmem>>, vector<1x8x128xbf16>
    %22 = vector.shape_cast %21 : vector<1x8x128xbf16> to vector<8x128xbf16>
    %cst_21 = arith.constant dense<0.000000e+00> : vector<72x128xf32>
    %23 = tpu.matmul %20, %22, %cst_21 {dimension_numbers = #tpu.dot_dimension_numbers<[1], [0], [0], [1], [0, 0, 1, 1], [], []>} : vector<72x8xbf16>, vector<8x128xbf16>, vector<72x128xf32> -> vector<72x128xf32>
    %24 = arith.addf %18, %23 : vector<72x128xf32>
    %c0_22 = arith.constant 0 : index
    %c270 = arith.constant 270 : index
    %c0_23 = arith.constant 0 : index
    %25 = vector.load %arg1[%c0_22, %c270, %c0_23] : memref<1x360x8xbf16, #tpu.memory_space<vmem>>, vector<1x72x8xbf16>
    %26 = vector.shape_cast %25 : vector<1x72x8xbf16> to vector<72x8xbf16>
    %c4 = arith.constant 4 : index
    %c0_24 = arith.constant 0 : index
    %c0_25 = arith.constant 0 : index
    %27 = vector.load %arg2[%c4, %c0_24, %c0_25] : memref<9x8x128xbf16, #tpu.memory_space<vmem>>, vector<1x8x128xbf16>
    %28 = vector.shape_cast %27 : vector<1x8x128xbf16> to vector<8x128xbf16>
    %cst_26 = arith.constant dense<0.000000e+00> : vector<72x128xf32>
    %29 = tpu.matmul %26, %28, %cst_26 {dimension_numbers = #tpu.dot_dimension_numbers<[1], [0], [0], [1], [0, 0, 1, 1], [], []>} : vector<72x8xbf16>, vector<8x128xbf16>, vector<72x128xf32> -> vector<72x128xf32>
    %30 = arith.addf %24, %29 : vector<72x128xf32>
    %c0_27 = arith.constant 0 : index
    %c181 = arith.constant 181 : index
    %c0_28 = arith.constant 0 : index
    %31 = vector.load %arg1[%c0_27, %c181, %c0_28] : memref<1x360x8xbf16, #tpu.memory_space<vmem>>, vector<1x72x8xbf16>
    %32 = vector.shape_cast %31 : vector<1x72x8xbf16> to vector<72x8xbf16>
    %c5 = arith.constant 5 : index
    %c0_29 = arith.constant 0 : index
    %c0_30 = arith.constant 0 : index
    %33 = vector.load %arg2[%c5, %c0_29, %c0_30] : memref<9x8x128xbf16, #tpu.memory_space<vmem>>, vector<1x8x128xbf16>
    %34 = vector.shape_cast %33 : vector<1x8x128xbf16> to vector<8x128xbf16>
    %cst_31 = arith.constant dense<0.000000e+00> : vector<72x128xf32>
    %35 = tpu.matmul %32, %34, %cst_31 {dimension_numbers = #tpu.dot_dimension_numbers<[1], [0], [0], [1], [0, 0, 1, 1], [], []>} : vector<72x8xbf16>, vector<8x128xbf16>, vector<72x128xf32> -> vector<72x128xf32>
    %36 = arith.addf %30, %35 : vector<72x128xf32>
    %c0_32 = arith.constant 0 : index
    %c9 = arith.constant 9 : index
    %c0_33 = arith.constant 0 : index
    %37 = vector.load %arg1[%c0_32, %c9, %c0_33] : memref<1x360x8xbf16, #tpu.memory_space<vmem>>, vector<1x72x8xbf16>
    %38 = vector.shape_cast %37 : vector<1x72x8xbf16> to vector<72x8xbf16>
    %c6 = arith.constant 6 : index
    %c0_34 = arith.constant 0 : index
    %c0_35 = arith.constant 0 : index
    %39 = vector.load %arg2[%c6, %c0_34, %c0_35] : memref<9x8x128xbf16, #tpu.memory_space<vmem>>, vector<1x8x128xbf16>
    %40 = vector.shape_cast %39 : vector<1x8x128xbf16> to vector<8x128xbf16>
    %cst_36 = arith.constant dense<0.000000e+00> : vector<72x128xf32>
    %41 = tpu.matmul %38, %40, %cst_36 {dimension_numbers = #tpu.dot_dimension_numbers<[1], [0], [0], [1], [0, 0, 1, 1], [], []>} : vector<72x8xbf16>, vector<8x128xbf16>, vector<72x128xf32> -> vector<72x128xf32>
    %42 = arith.addf %36, %41 : vector<72x128xf32>
    %c0_37 = arith.constant 0 : index
    %c99 = arith.constant 99 : index
    %c0_38 = arith.constant 0 : index
    %43 = vector.load %arg1[%c0_37, %c99, %c0_38] : memref<1x360x8xbf16, #tpu.memory_space<vmem>>, vector<1x72x8xbf16>
    %44 = vector.shape_cast %43 : vector<1x72x8xbf16> to vector<72x8xbf16>
    %c7 = arith.constant 7 : index
    %c0_39 = arith.constant 0 : index
    %c0_40 = arith.constant 0 : index
    %45 = vector.load %arg2[%c7, %c0_39, %c0_40] : memref<9x8x128xbf16, #tpu.memory_space<vmem>>, vector<1x8x128xbf16>
    %46 = vector.shape_cast %45 : vector<1x8x128xbf16> to vector<8x128xbf16>
    %cst_41 = arith.constant dense<0.000000e+00> : vector<72x128xf32>
    %47 = tpu.matmul %44, %46, %cst_41 {dimension_numbers = #tpu.dot_dimension_numbers<[1], [0], [0], [1], [0, 0, 1, 1], [], []>} : vector<72x8xbf16>, vector<8x128xbf16>, vector<72x128xf32> -> vector<72x128xf32>
    %48 = arith.addf %42, %47 : vector<72x128xf32>
    %c0_42 = arith.constant 0 : index
    %c10 = arith.constant 10 : index
    %c0_43 = arith.constant 0 : index
    %49 = vector.load %arg1[%c0_42, %c10, %c0_43] : memref<1x360x8xbf16, #tpu.memory_space<vmem>>, vector<1x72x8xbf16>
    %50 = vector.shape_cast %49 : vector<1x72x8xbf16> to vector<72x8xbf16>
    %c8 = arith.constant 8 : index
    %c0_44 = arith.constant 0 : index
    %c0_45 = arith.constant 0 : index
    %51 = vector.load %arg2[%c8, %c0_44, %c0_45] : memref<9x8x128xbf16, #tpu.memory_space<vmem>>, vector<1x8x128xbf16>
    %52 = vector.shape_cast %51 : vector<1x8x128xbf16> to vector<8x128xbf16>
    %cst_46 = arith.constant dense<0.000000e+00> : vector<72x128xf32>
    %53 = tpu.matmul %50, %52, %cst_46 {dimension_numbers = #tpu.dot_dimension_numbers<[1], [0], [0], [1], [0, 0, 1, 1], [], []>} : vector<72x8xbf16>, vector<8x128xbf16>, vector<72x128xf32> -> vector<72x128xf32>
    %54 = arith.addf %48, %53 : vector<72x128xf32>
    %c0_47 = arith.constant 0 : index
    %c0_48 = arith.constant 0 : index
    %55 = vector.load %arg3[%c0_47, %c0_48] : memref<1x128xf32, #tpu.memory_space<vmem>>, vector<1x128xf32>
    %56 = vector.broadcast %55 : vector<1x128xf32> to vector<72x128xf32>
    %57 = arith.addf %54, %56 : vector<72x128xf32>
    %cst_49 = arith.constant 0.000000e+00 : f32
    %58 = vector.broadcast %cst_49 : f32 to vector<72x128xf32>
    %59 = arith.maximumf %57, %58 : vector<72x128xf32>
    %60 = arith.truncf %59 : vector<72x128xf32> to vector<72x128xbf16>
    %c0_50 = arith.constant 0 : index
    %c0_51 = arith.constant 0 : index
    %c0_52 = arith.constant 0 : index
    %61 = vector.load %arg4[%c0_50, %c0_51, %c0_52] : memref<1x72x128xbf16, #tpu.memory_space<vmem>>, vector<1x72x128xbf16>
    %62 = vector.shape_cast %61 : vector<1x72x128xbf16> to vector<72x128xbf16>
    %63 = vector.shape_cast %60 : vector<72x128xbf16> to vector<1x72x128xbf16>
    tpu.vector_store %arg4[%c0_50, %c0_51, %c0_52], %63 {strides = array<i32>} : memref<1x72x128xbf16, #tpu.memory_space<vmem>>, vector<1x72x128xbf16>,
    return
  }
  func.func @transform_0(%arg0: i32) -> (i32, i32, i32) {
    %c0_i32 = arith.constant 0 : i32
    %c0_i32_0 = arith.constant 0 : i32
    %c0_i32_1 = arith.constant 0 : i32
    return %arg0, %c0_i32, %c0_i32_0 : i32, i32, i32
  }
  func.func @transform_1(%arg0: i32) -> (i32, i32, i32) {
    %c0_i32 = arith.constant 0 : i32
    %c0_i32_0 = arith.constant 0 : i32
    %c0_i32_1 = arith.constant 0 : i32
    %c0_i32_2 = arith.constant 0 : i32
    return %c0_i32, %c0_i32_0, %c0_i32_1 : i32, i32, i32
  }
  func.func @transform_2(%arg0: i32) -> (i32, i32) {
    %c0_i32 = arith.constant 0 : i32
    %c0_i32_0 = arith.constant 0 : i32
    %c0_i32_1 = arith.constant 0 : i32
    return %c0_i32, %c0_i32_0 : i32, i32
  }
  func.func @transform_3(%arg0: i32) -> (i32, i32, i32) {
    %c0_i32 = arith.constant 0 : i32
    %c0_i32_0 = arith.constant 0 : i32
    %c0_i32_1 = arith.constant 0 : i32
    return %arg0, %c0_i32, %c0_i32_0 : i32, i32, i32
  }
}

module attributes {stable_mosaic.version = 11 : i64} {
  func.func @_conv_bias_kernel(%arg0: i32, %arg1: memref<1x64x8xbf16, #tpu.memory_space<vmem>>, %arg2: memref<1x8x128xbf16, #tpu.memory_space<vmem>>, %arg3: memref<1x128xf32, #tpu.memory_space<vmem>>, %arg4: memref<1x64x128xbf16, #tpu.memory_space<vmem>>) attributes {dimension_semantics = [#tpu.dimension_semantics<parallel>], iteration_bounds = array<i64: 2>, scalar_prefetch = 0 : i64, scratch_operands = 0 : i64, tpu.core_type = #tpu.core_type<tc>, window_params = [{transform_indices = @transform_0, window_bounds = array<i64: 1, 64, 8>}, {pipeline_mode = #tpu.pipeline_mode<synchronous>, transform_indices = @transform_1, window_bounds = array<i64: 1, 8, 128>}, {pipeline_mode = #tpu.pipeline_mode<synchronous>, transform_indices = @transform_2, window_bounds = array<i64: 1, 128>}, {transform_indices = @transform_3, window_bounds = array<i64: 1, 64, 128>}]} {
    %cst = arith.constant 0.000000e+00 : f32
    %0 = vector.broadcast %cst : f32 to vector<64x128xf32>
    %c0 = arith.constant 0 : index
    %c0_0 = arith.constant 0 : index
    %c0_1 = arith.constant 0 : index
    %1 = vector.load %arg1[%c0, %c0_0, %c0_1] : memref<1x64x8xbf16, #tpu.memory_space<vmem>>, vector<1x64x8xbf16>
    %2 = vector.shape_cast %1 : vector<1x64x8xbf16> to vector<64x8xbf16>
    %c0_2 = arith.constant 0 : index
    %c0_3 = arith.constant 0 : index
    %c0_4 = arith.constant 0 : index
    %3 = vector.load %arg2[%c0_2, %c0_3, %c0_4] : memref<1x8x128xbf16, #tpu.memory_space<vmem>>, vector<1x8x128xbf16>
    %4 = vector.shape_cast %3 : vector<1x8x128xbf16> to vector<8x128xbf16>
    %cst_5 = arith.constant dense<0.000000e+00> : vector<64x128xf32>
    %5 = tpu.matmul %2, %4, %cst_5 {dimension_numbers = #tpu.dot_dimension_numbers<[1], [0], [0], [1], [0, 0, 1, 1], [], []>} : vector<64x8xbf16>, vector<8x128xbf16>, vector<64x128xf32> -> vector<64x128xf32>
    %6 = arith.addf %0, %5 : vector<64x128xf32>
    %c0_6 = arith.constant 0 : index
    %c0_7 = arith.constant 0 : index
    %7 = vector.load %arg3[%c0_6, %c0_7] : memref<1x128xf32, #tpu.memory_space<vmem>>, vector<1x128xf32>
    %8 = vector.broadcast %7 : vector<1x128xf32> to vector<64x128xf32>
    %9 = arith.addf %6, %8 : vector<64x128xf32>
    %10 = arith.truncf %9 : vector<64x128xf32> to vector<64x128xbf16>
    %c0_8 = arith.constant 0 : index
    %c0_9 = arith.constant 0 : index
    %c0_10 = arith.constant 0 : index
    %11 = vector.load %arg4[%c0_8, %c0_9, %c0_10] : memref<1x64x128xbf16, #tpu.memory_space<vmem>>, vector<1x64x128xbf16>
    %12 = vector.shape_cast %11 : vector<1x64x128xbf16> to vector<64x128xbf16>
    %13 = vector.shape_cast %10 : vector<64x128xbf16> to vector<1x64x128xbf16>
    tpu.vector_store %arg4[%c0_8, %c0_9, %c0_10], %13 {strides = array<i32>} : memref<1x64x128xbf16, #tpu.memory_space<vmem>>, vector<1x64x128xbf16>,
    return
  }
  func.func @transform_0(%arg0: i32) -> (i32, i32, i32) {
    %c0_i32 = arith.constant 0 : i32
    %c0_i32_0 = arith.constant 0 : i32
    %c0_i32_1 = arith.constant 0 : i32
    return %arg0, %c0_i32, %c0_i32_0 : i32, i32, i32
  }
  func.func @transform_1(%arg0: i32) -> (i32, i32, i32) {
    %c0_i32 = arith.constant 0 : i32
    %c0_i32_0 = arith.constant 0 : i32
    %c0_i32_1 = arith.constant 0 : i32
    %c0_i32_2 = arith.constant 0 : i32
    return %c0_i32, %c0_i32_0, %c0_i32_1 : i32, i32, i32
  }
  func.func @transform_2(%arg0: i32) -> (i32, i32) {
    %c0_i32 = arith.constant 0 : i32
    %c0_i32_0 = arith.constant 0 : i32
    %c0_i32_1 = arith.constant 0 : i32
    return %c0_i32, %c0_i32_0 : i32, i32
  }
  func.func @transform_3(%arg0: i32) -> (i32, i32, i32) {
    %c0_i32 = arith.constant 0 : i32
    %c0_i32_0 = arith.constant 0 : i32
    %c0_i32_1 = arith.constant 0 : i32
    return %arg0, %c0_i32, %c0_i32_0 : i32, i32, i32
  }
}

module attributes {stable_mosaic.version = 11 : i64} {
  func.func @_conv_bias_add_relu_kernel(%arg0: i32, %arg1: memref<1x110x128xbf16, #tpu.memory_space<vmem>>, %arg2: memref<9x128x128xbf16, #tpu.memory_space<vmem>>, %arg3: memref<1x128xf32, #tpu.memory_space<vmem>>, %arg4: memref<1x80x128xbf16, #tpu.memory_space<vmem>>, %arg5: memref<1x80x128xf32, #tpu.memory_space<vmem>>) attributes {dimension_semantics = [#tpu.dimension_semantics<parallel>], iteration_bounds = array<i64: 2>, scalar_prefetch = 0 : i64, scratch_operands = 0 : i64, tpu.core_type = #tpu.core_type<tc>, window_params = [{transform_indices = @transform_0, window_bounds = array<i64: 1, 110, 128>}, {pipeline_mode = #tpu.pipeline_mode<synchronous>, transform_indices = @transform_1, window_bounds = array<i64: 9, 128, 128>}, {pipeline_mode = #tpu.pipeline_mode<synchronous>, transform_indices = @transform_2, window_bounds = array<i64: 1, 128>}, {transform_indices = @transform_3, window_bounds = array<i64: 1, 80, 128>}, {transform_indices = @transform_4, window_bounds = array<i64: 1, 80, 128>}]} {
    %cst = arith.constant 0.000000e+00 : f32
    %0 = vector.broadcast %cst : f32 to vector<80x128xf32>
    %c0 = arith.constant 0 : index
    %c0_0 = arith.constant 0 : index
    %c0_1 = arith.constant 0 : index
    %1 = vector.load %arg1[%c0, %c0_0, %c0_1] : memref<1x110x128xbf16, #tpu.memory_space<vmem>>, vector<1x80x128xbf16>
    %2 = vector.shape_cast %1 : vector<1x80x128xbf16> to vector<80x128xbf16>
    %c0_2 = arith.constant 0 : index
    %c0_3 = arith.constant 0 : index
    %c0_4 = arith.constant 0 : index
    %3 = vector.load %arg2[%c0_2, %c0_3, %c0_4] : memref<9x128x128xbf16, #tpu.memory_space<vmem>>, vector<1x128x128xbf16>
    %4 = vector.shape_cast %3 : vector<1x128x128xbf16> to vector<128x128xbf16>
    %cst_5 = arith.constant dense<0.000000e+00> : vector<80x128xf32>
    %5 = tpu.matmul %2, %4, %cst_5 {dimension_numbers = #tpu.dot_dimension_numbers<[1], [0], [0], [1], [0, 0, 1, 1], [], []>} : vector<80x128xbf16>, vector<128x128xbf16>, vector<80x128xf32> -> vector<80x128xf32>
    %6 = arith.addf %0, %5 : vector<80x128xf32>
    %c0_6 = arith.constant 0 : index
    %c1 = arith.constant 1 : index
    %c0_7 = arith.constant 0 : index
    %7 = vector.load %arg1[%c0_6, %c1, %c0_7] : memref<1x110x128xbf16, #tpu.memory_space<vmem>>, vector<1x80x128xbf16>
    %8 = vector.shape_cast %7 : vector<1x80x128xbf16> to vector<80x128xbf16>
    %c1_8 = arith.constant 1 : index
    %c0_9 = arith.constant 0 : index
    %c0_10 = arith.constant 0 : index
    %9 = vector.load %arg2[%c1_8, %c0_9, %c0_10] : memref<9x128x128xbf16, #tpu.memory_space<vmem>>, vector<1x128x128xbf16>
    %10 = vector.shape_cast %9 : vector<1x128x128xbf16> to vector<128x128xbf16>
    %cst_11 = arith.constant dense<0.000000e+00> : vector<80x128xf32>
    %11 = tpu.matmul %8, %10, %cst_11 {dimension_numbers = #tpu.dot_dimension_numbers<[1], [0], [0], [1], [0, 0, 1, 1], [], []>} : vector<80x128xbf16>, vector<128x128xbf16>, vector<80x128xf32> -> vector<80x128xf32>
    %12 = arith.addf %6, %11 : vector<80x128xf32>
    %c0_12 = arith.constant 0 : index
    %c2 = arith.constant 2 : index
    %c0_13 = arith.constant 0 : index
    %13 = vector.load %arg1[%c0_12, %c2, %c0_13] : memref<1x110x128xbf16, #tpu.memory_space<vmem>>, vector<1x80x128xbf16>
    %14 = vector.shape_cast %13 : vector<1x80x128xbf16> to vector<80x128xbf16>
    %c2_14 = arith.constant 2 : index
    %c0_15 = arith.constant 0 : index
    %c0_16 = arith.constant 0 : index
    %15 = vector.load %arg2[%c2_14, %c0_15, %c0_16] : memref<9x128x128xbf16, #tpu.memory_space<vmem>>, vector<1x128x128xbf16>
    %16 = vector.shape_cast %15 : vector<1x128x128xbf16> to vector<128x128xbf16>
    %cst_17 = arith.constant dense<0.000000e+00> : vector<80x128xf32>
    %17 = tpu.matmul %14, %16, %cst_17 {dimension_numbers = #tpu.dot_dimension_numbers<[1], [0], [0], [1], [0, 0, 1, 1], [], []>} : vector<80x128xbf16>, vector<128x128xbf16>, vector<80x128xf32> -> vector<80x128xf32>
    %18 = arith.addf %12, %17 : vector<80x128xf32>
    %c0_18 = arith.constant 0 : index
    %c10 = arith.constant 10 : index
    %c0_19 = arith.constant 0 : index
    %19 = vector.load %arg1[%c0_18, %c10, %c0_19] : memref<1x110x128xbf16, #tpu.memory_space<vmem>>, vector<1x80x128xbf16>
    %20 = vector.shape_cast %19 : vector<1x80x128xbf16> to vector<80x128xbf16>
    %c3 = arith.constant 3 : index
    %c0_20 = arith.constant 0 : index
    %c0_21 = arith.constant 0 : index
    %21 = vector.load %arg2[%c3, %c0_20, %c0_21] : memref<9x128x128xbf16, #tpu.memory_space<vmem>>, vector<1x128x128xbf16>
    %22 = vector.shape_cast %21 : vector<1x128x128xbf16> to vector<128x128xbf16>
    %cst_22 = arith.constant dense<0.000000e+00> : vector<80x128xf32>
    %23 = tpu.matmul %20, %22, %cst_22 {dimension_numbers = #tpu.dot_dimension_numbers<[1], [0], [0], [1], [0, 0, 1, 1], [], []>} : vector<80x128xbf16>, vector<128x128xbf16>, vector<80x128xf32> -> vector<80x128xf32>
    %24 = arith.addf %18, %23 : vector<80x128xf32>
    %c0_23 = arith.constant 0 : index
    %c11 = arith.constant 11 : index
    %c0_24 = arith.constant 0 : index
    %25 = vector.load %arg1[%c0_23, %c11, %c0_24] : memref<1x110x128xbf16, #tpu.memory_space<vmem>>, vector<1x80x128xbf16>
    %26 = vector.shape_cast %25 : vector<1x80x128xbf16> to vector<80x128xbf16>
    %c4 = arith.constant 4 : index
    %c0_25 = arith.constant 0 : index
    %c0_26 = arith.constant 0 : index
    %27 = vector.load %arg2[%c4, %c0_25, %c0_26] : memref<9x128x128xbf16, #tpu.memory_space<vmem>>, vector<1x128x128xbf16>
    %28 = vector.shape_cast %27 : vector<1x128x128xbf16> to vector<128x128xbf16>
    %cst_27 = arith.constant dense<0.000000e+00> : vector<80x128xf32>
    %29 = tpu.matmul %26, %28, %cst_27 {dimension_numbers = #tpu.dot_dimension_numbers<[1], [0], [0], [1], [0, 0, 1, 1], [], []>} : vector<80x128xbf16>, vector<128x128xbf16>, vector<80x128xf32> -> vector<80x128xf32>
    %30 = arith.addf %24, %29 : vector<80x128xf32>
    %c0_28 = arith.constant 0 : index
    %c12 = arith.constant 12 : index
    %c0_29 = arith.constant 0 : index
    %31 = vector.load %arg1[%c0_28, %c12, %c0_29] : memref<1x110x128xbf16, #tpu.memory_space<vmem>>, vector<1x80x128xbf16>
    %32 = vector.shape_cast %31 : vector<1x80x128xbf16> to vector<80x128xbf16>
    %c5 = arith.constant 5 : index
    %c0_30 = arith.constant 0 : index
    %c0_31 = arith.constant 0 : index
    %33 = vector.load %arg2[%c5, %c0_30, %c0_31] : memref<9x128x128xbf16, #tpu.memory_space<vmem>>, vector<1x128x128xbf16>
    %34 = vector.shape_cast %33 : vector<1x128x128xbf16> to vector<128x128xbf16>
    %cst_32 = arith.constant dense<0.000000e+00> : vector<80x128xf32>
    %35 = tpu.matmul %32, %34, %cst_32 {dimension_numbers = #tpu.dot_dimension_numbers<[1], [0], [0], [1], [0, 0, 1, 1], [], []>} : vector<80x128xbf16>, vector<128x128xbf16>, vector<80x128xf32> -> vector<80x128xf32>
    %36 = arith.addf %30, %35 : vector<80x128xf32>
    %c0_33 = arith.constant 0 : index
    %c20 = arith.constant 20 : index
    %c0_34 = arith.constant 0 : index
    %37 = vector.load %arg1[%c0_33, %c20, %c0_34] : memref<1x110x128xbf16, #tpu.memory_space<vmem>>, vector<1x80x128xbf16>
    %38 = vector.shape_cast %37 : vector<1x80x128xbf16> to vector<80x128xbf16>
    %c6 = arith.constant 6 : index
    %c0_35 = arith.constant 0 : index
    %c0_36 = arith.constant 0 : index
    %39 = vector.load %arg2[%c6, %c0_35, %c0_36] : memref<9x128x128xbf16, #tpu.memory_space<vmem>>, vector<1x128x128xbf16>
    %40 = vector.shape_cast %39 : vector<1x128x128xbf16> to vector<128x128xbf16>
    %cst_37 = arith.constant dense<0.000000e+00> : vector<80x128xf32>
    %41 = tpu.matmul %38, %40, %cst_37 {dimension_numbers = #tpu.dot_dimension_numbers<[1], [0], [0], [1], [0, 0, 1, 1], [], []>} : vector<80x128xbf16>, vector<128x128xbf16>, vector<80x128xf32> -> vector<80x128xf32>
    %42 = arith.addf %36, %41 : vector<80x128xf32>
    %c0_38 = arith.constant 0 : index
    %c21 = arith.constant 21 : index
    %c0_39 = arith.constant 0 : index
    %43 = vector.load %arg1[%c0_38, %c21, %c0_39] : memref<1x110x128xbf16, #tpu.memory_space<vmem>>, vector<1x80x128xbf16>
    %44 = vector.shape_cast %43 : vector<1x80x128xbf16> to vector<80x128xbf16>
    %c7 = arith.constant 7 : index
    %c0_40 = arith.constant 0 : index
    %c0_41 = arith.constant 0 : index
    %45 = vector.load %arg2[%c7, %c0_40, %c0_41] : memref<9x128x128xbf16, #tpu.memory_space<vmem>>, vector<1x128x128xbf16>
    %46 = vector.shape_cast %45 : vector<1x128x128xbf16> to vector<128x128xbf16>
    %cst_42 = arith.constant dense<0.000000e+00> : vector<80x128xf32>
    %47 = tpu.matmul %44, %46, %cst_42 {dimension_numbers = #tpu.dot_dimension_numbers<[1], [0], [0], [1], [0, 0, 1, 1], [], []>} : vector<80x128xbf16>, vector<128x128xbf16>, vector<80x128xf32> -> vector<80x128xf32>
    %48 = arith.addf %42, %47 : vector<80x128xf32>
    %c0_43 = arith.constant 0 : index
    %c22 = arith.constant 22 : index
    %c0_44 = arith.constant 0 : index
    %49 = vector.load %arg1[%c0_43, %c22, %c0_44] : memref<1x110x128xbf16, #tpu.memory_space<vmem>>, vector<1x80x128xbf16>
    %50 = vector.shape_cast %49 : vector<1x80x128xbf16> to vector<80x128xbf16>
    %c8 = arith.constant 8 : index
    %c0_45 = arith.constant 0 : index
    %c0_46 = arith.constant 0 : index
    %51 = vector.load %arg2[%c8, %c0_45, %c0_46] : memref<9x128x128xbf16, #tpu.memory_space<vmem>>, vector<1x128x128xbf16>
    %52 = vector.shape_cast %51 : vector<1x128x128xbf16> to vector<128x128xbf16>
    %cst_47 = arith.constant dense<0.000000e+00> : vector<80x128xf32>
    %53 = tpu.matmul %50, %52, %cst_47 {dimension_numbers = #tpu.dot_dimension_numbers<[1], [0], [0], [1], [0, 0, 1, 1], [], []>} : vector<80x128xbf16>, vector<128x128xbf16>, vector<80x128xf32> -> vector<80x128xf32>
    %54 = arith.addf %48, %53 : vector<80x128xf32>
    %c0_48 = arith.constant 0 : index
    %c0_49 = arith.constant 0 : index
    %55 = vector.load %arg3[%c0_48, %c0_49] : memref<1x128xf32, #tpu.memory_space<vmem>>, vector<1x128xf32>
    %56 = vector.broadcast %55 : vector<1x128xf32> to vector<80x128xf32>
    %57 = arith.addf %54, %56 : vector<80x128xf32>
    %c0_50 = arith.constant 0 : index
    %c0_51 = arith.constant 0 : index
    %c0_52 = arith.constant 0 : index
    %58 = vector.load %arg4[%c0_50, %c0_51, %c0_52] : memref<1x80x128xbf16, #tpu.memory_space<vmem>>, vector<1x80x128xbf16>
    %59 = vector.shape_cast %58 : vector<1x80x128xbf16> to vector<80x128xbf16>
    %60 = arith.extf %59 : vector<80x128xbf16> to vector<80x128xf32>
    %61 = arith.addf %57, %60 : vector<80x128xf32>
    %cst_53 = arith.constant 0.000000e+00 : f32
    %62 = vector.broadcast %cst_53 : f32 to vector<80x128xf32>
    %63 = arith.maximumf %61, %62 : vector<80x128xf32>
    %c0_54 = arith.constant 0 : index
    %c0_55 = arith.constant 0 : index
    %c0_56 = arith.constant 0 : index
    %64 = vector.load %arg5[%c0_54, %c0_55, %c0_56] : memref<1x80x128xf32, #tpu.memory_space<vmem>>, vector<1x80x128xf32>
    %65 = vector.shape_cast %64 : vector<1x80x128xf32> to vector<80x128xf32>
    %66 = vector.shape_cast %63 : vector<80x128xf32> to vector<1x80x128xf32>
    tpu.vector_store %arg5[%c0_54, %c0_55, %c0_56], %66 {strides = array<i32>} : memref<1x80x128xf32, #tpu.memory_space<vmem>>, vector<1x80x128xf32>,
    return
  }
  func.func @transform_0(%arg0: i32) -> (i32, i32, i32) {
    %c0_i32 = arith.constant 0 : i32
    %c0_i32_0 = arith.constant 0 : i32
    %c0_i32_1 = arith.constant 0 : i32
    return %arg0, %c0_i32, %c0_i32_0 : i32, i32, i32
  }
  func.func @transform_1(%arg0: i32) -> (i32, i32, i32) {
    %c0_i32 = arith.constant 0 : i32
    %c0_i32_0 = arith.constant 0 : i32
    %c0_i32_1 = arith.constant 0 : i32
    %c0_i32_2 = arith.constant 0 : i32
    return %c0_i32, %c0_i32_0, %c0_i32_1 : i32, i32, i32
  }
  func.func @transform_2(%arg0: i32) -> (i32, i32) {
    %c0_i32 = arith.constant 0 : i32
    %c0_i32_0 = arith.constant 0 : i32
    %c0_i32_1 = arith.constant 0 : i32
    return %c0_i32, %c0_i32_0 : i32, i32
  }
  func.func @transform_3(%arg0: i32) -> (i32, i32, i32) {
    %c0_i32 = arith.constant 0 : i32
    %c0_i32_0 = arith.constant 0 : i32
    %c0_i32_1 = arith.constant 0 : i32
    return %arg0, %c0_i32, %c0_i32_0 : i32, i32, i32
  }
  func.func @transform_4(%arg0: i32) -> (i32, i32, i32) {
    %c0_i32 = arith.constant 0 : i32
    %c0_i32_0 = arith.constant 0 : i32
    %c0_i32_1 = arith.constant 0 : i32
    return %arg0, %c0_i32, %c0_i32_0 : i32, i32, i32
  }
}

</mosaic_0001>

<bundles_post_ra>
// kernel: basic_block_forward.4
= control target key start
LH: loop header
LB: loop body
LE: loop exit
PB: predicated region body
PF: predicated region fallthrough
CT: control target
= control target key end

     0   :  { %s505_s12 = smov 0   ;;  %s528_s0 = inlined_call_operand.vmem [shape: bf16[2,64,8], index: 0, kind: input, shape index: {}]   ;;  %s529_s1 = inlined_call_operand.vmem [shape: bf16[1,8,128], index: 1, kind: input, shape index: {}]   ;;  %s530_s2 = inlined_call_operand.vmem [shape: f32[1,128], index: 2, kind: input, shape index: {}]   ;;  %s531_s3 = inlined_call_operand.vmem [shape: bf16[2,64,128], index: 3, kind: output, shape index: {}]  }
   0x1 LB: > { %s385_s13 = sadd.s32 4294967295, %s483_s12   ;;  %p389_p0 = scmp.ge.s32.totalorder %s483_s12, 1  ;;  %s483_s12 = sphi %s505_s12, %s13_s12  }
   0x2   : > { %p137_p1 = scmp.lt.s32.totalorder %s483_s12, 3 }
   0x4   : > { %p138_p2 = pnand %p389_p0, %p137_p1 }
   0x5   : > { %v180_v0 = vld [vmem:[%s529_s1] sm:$0xf] (!%p138_p2)  ;;  %vm221_vm0 = vcmask (!%p138_p2), 1043456   ;;  %p161_p3 = scmp.lt.s32.totalorder (!%p138_p2), %s385_s13, 1  ;;  %vm208_vm1 = vcmask (!%p138_p2), 64512  }
   0x6   : > { %141 = sbr.rel (%p138_p2) target bundleno = 238 (0xee), region = 32  ;;  %463 = vmatprep.subr.msk.bf16.mxu0 (!%p138_p2), %vm221_vm0, %v180_v0  ;;  %464 = vmatprep.subr.msk.bf16.mxu1 (!%p138_p2), %vm221_vm0, %v180_v0  ;;  %v223_v1 = vsel (!%p138_p2), %vm221_vm0, %v180_v0, 0  ;;  %v394_v7 = vld [vmem:[%s530_s2] ss:$0 sm:$0xff] (!%p138_p2) }
   0x7   : > { %452 = vmatpush3.bf16.msra.mxu0 (!%p138_p2), %v223_v1  ;;  %462 = vmatpush3.bf16.msra.mxu1 (!%p138_p2), %v223_v1 }
   0xd   : > { %s533_s13 = smov (!%p161_p3, %s385_s13), 1 }
   0xe   : > { %s413_s16 = sshll.u32 %s533_s13, 5 }
   0xf   : > { %s165_s19 = scalar_lea.vmem %s528_s0, %s413_s16  ;;  %s170_s24 = scalar_lea.vmem %s531_s3, %s413_s16 }
  0x10   : > { %v473_v2 = vld [vmem:[%s165_s19] sm:$0xff]   ;;  %v474_v3 = vld [vmem:[%s165_s19 + $0x10] sm:$0xff]   ;;  %v475_v4 = vld [vmem:[%s165_s19 + $0x8] sm:$0xff]  }
  0x11   : > { %453 = vmatprep.mubr.msk.bf16.mxu0 %vm208_vm1, %v473_v2  ;;  %457 = vmatprep.mubr.msk.bf16.mxu1 %vm208_vm1, %v474_v3  ;;  %v476_v5 = vld [vmem:[%s165_s19 + $0x18] sm:$0xff]  }
  0x12   : > { %454 = vmatmul.mubr.msk.bf16.vlgmr.msra.gmra.mrb[0].mxu0 %vm208_vm1, %v475_v4  ;;  %458 = vmatmul.mubr.msk.bf16.vlgmr.msra.gmra.mrb[0].mxu1 %vm208_vm1, %v476_v5 }
  0xe5   : > { %v455_v6 = vpop.f32.mrb[0].mxu0  ;;  %v459_v8 = vpop.f32.mrb[0].mxu1 }
  0xe6   : > { %v259_v9 = vpop.f32.mrb[1].mxu0  ;;  %v275_v10 = vpop.f32.mrb[1].mxu1  ;;  %v268_v12 = vadd.f32 %v455_v6, %v394_v7  ;;  %v284_v16 = vadd.f32 %v459_v8, %v394_v7 }
  0xe7   : > { %v456_v11 = vpop.f32.mrb[2].mxu0  ;;  %v460_v14 = vpop.f32.mrb[2].mxu1  ;;  %v260_v17 = vadd.f32 %v394_v7, %v259_v9  ;;  %v276_v21 = vadd.f32 %v394_v7, %v275_v10 }
  0xe8   : > { %v271_v13 = vadd.f32 %v456_v11, %v394_v7  ;;  %v262_v15 = vpop.f32.mrb[3].mxu0  ;;  %v287_v18 = vadd.f32 %v460_v14, %v394_v7  ;;  %v278_v20 = vpop.f32.mrb[3].mxu1 }
  0xe9   : > { %v263_v19 = vadd.f32 %v394_v7, %v262_v15  ;;  %v279_v23 = vadd.f32 %v394_v7, %v278_v20 }
  0xea   : > { %v431_v22 = vpack.c.bf16 %v271_v13, %v268_v12  ;;  %v441_v24 = vpack.c.bf16 %v287_v18, %v284_v16 }
  0xeb   : > { %v426_v25 = vpack.c.bf16 %v263_v19, %v260_v17  ;;  %v436_v26 = vpack.c.bf16 %v279_v23, %v276_v21 }
  0xec   : > { %443 = vst [vmem:[%s170_s24 + $0x8] sm:$0xff] %v431_v22   ;;  %445 = vst [vmem:[%s170_s24 + $0x18] sm:$0xff] %v441_v24  }
  0xed   : > { %427 = vst [vmem:[%s170_s24] sm:$0xff] %v426_v25   ;;  %444 = vst [vmem:[%s170_s24 + $0x10] sm:$0xff] %v436_v26  }
  0xee PF: > { %s13_s12 = sadd.s32 1, %s483_s12  }
  0xef   : > { %p10_p4 = scmp.ge.s32.totalorder %s13_s12, 4  }
  0xf1   :  { %12 = sbr.rel (!%p10_p4) target bundleno = 1 (0x1), region = 62 }

// kernel: basic_block_forward.3
= control target key start
LH: loop header
LB: loop body
LE: loop exit
PB: predicated region body
PF: predicated region fallthrough
CT: control target
= control target key end

     0   :  { %s2122_s12 = smov 0   ;;  %s2489_s0 = inlined_call_operand.vmem [shape: bf16[2,360,8], index: 0, kind: input, shape index: {}]   ;;  %s2490_s1 = inlined_call_operand.vmem [shape: bf16[9,8,128], index: 1, kind: input, shape index: {}]   ;;  %s2491_s2 = inlined_call_operand.vmem [shape: f32[1,128], index: 2, kind: input, shape index: {}]   ;;  %s2492_s3 = inlined_call_operand.vmem [shape: bf16[2,72,128], index: 3, kind: output, shape index: {}]  }
   0x1 LB: > { %s1648_s13 = sadd.s32 4294967295, %s2098_s12   ;;  %p1652_p0 = scmp.ge.s32.totalorder %s2098_s12, 1  ;;  %s2098_s12 = sphi %s2122_s12, %s13_s12  }
   0x2   : > { %p137_p1 = scmp.lt.s32.totalorder %s2098_s12, 3 }
   0x4   : > { %p138_p2 = pnand %p1652_p0, %p137_p1 }
   0x5   : > { %v1655_v0 = vld [vmem:[%s2490_s1 + $0x4] sm:$0xf] (!%p138_p2)  ;;  %vm245_vm0 = vcmask (!%p138_p2), 1043456   ;;  %p161_p3 = scmp.lt.s32.totalorder (!%p138_p2), %s1648_s13, 1  ;;  %v2100_v1 = vmov (!%p138_p2), 0.0   ;;  %vm2101_vm1 = vmmov (!%p138_p2), 0  }
   0x6   : > { %141 = sbr.rel (%p138_p2) target bundleno = 418 (0x1a2), region = 32  ;;  %1843 = vmatprep.subr.bf16.mxu0 (!%p138_p2), %v2100_v1  ;;  %2041 = vmatprep.subr.bf16.mxu1 (!%p138_p2), %v2100_v1  ;;  %v247_v2 = vsel (!%p138_p2), %vm245_vm0, %v1655_v0, 0  ;;  %v1676_v3 = vld [vmem:[%s2490_s1 + $0x8] sm:$0xf] (!%p138_p2)  ;;  %vm219_vm2 = vcmask (!%p138_p2), 1046528   ;;  %vm229_vm3 = vcmask (!%p138_p2), 64512  }
   0x7   : > { %1844 = vmatpush3.bf16.msra.mxu0 (!%p138_p2), %v247_v2  ;;  %2042 = vmatpush3.bf16.msra.mxu1 (!%p138_p2), %v247_v2  ;;  %v527_v6 = vsel (!%p138_p2), %vm245_vm0, %v1676_v3, 0  ;;  %v181_v7 = vld [vmem:[%s2490_s1] sm:$0xf] (!%p138_p2)  ;;  %v1687_v27 = vld [vmem:[%s2490_s1 + $0xc] sm:$0xf] (!%p138_p2)  ;;  %vm647_vm5 = vcmask (!%p138_p2), 1045504  }
   0x8   : > { %1845 = vmatprep.mubr.msk.bf16.mxu0 (!%p138_p2), %vm2101_vm1, %v2100_v1  ;;  %1857 = vmatprep.mubr.msk.bf16.mxu1 (!%p138_p2), %vm2101_vm1, %v2100_v1  ;;  %v360_v16 = vsel (!%p138_p2), %vm245_vm0, %v181_v7, 0  ;;  %v673_v30 = vsel (!%p138_p2), %vm245_vm0, %v1687_v27, 0  ;;  %vm471_vm4 = vsmask.f32 (!%p138_p2), 7424  ;;  %v1698_v33 = vld [vmem:[%s2490_s1 + $0x10] sm:$0xf] (!%p138_p2) }
   0x9   : > { %1887 = vmatprep.subr.bf16.mxu0 (!%p138_p2), %v2100_v1  ;;  %1865 = vmatprep.subr.bf16.mxu1 (!%p138_p2), %v2100_v1  ;;  %v819_v37 = vsel (!%p138_p2), %vm245_vm0, %v1698_v33, 0  ;;  %vm793_vm6 = vcmask (!%p138_p2), 1044480   ;;  %vm908_vm7 = vsmask.f32 (!%p138_p2), 5376  ;;  %vm1264_vm8 = vsmask.f32 (!%p138_p2), 6400 }
   0xd   : > { %s2494_s13 = smov (!%p161_p3, %s1648_s13), 1 }
   0xe   : > { %s2043_s16 = smul.u32 180, %s2494_s13 }
   0xf   : > { %s2044_s11 = smul.u32 36, %s2494_s13 }
  0x10   : > { %s2151_s21 = scalar_lea.vmem %s2489_s0, %s2043_s16 }
  0x11   : > { %v2055_v4 = vld [vmem:[%s2151_s21 + $0x2c] sm:$0xfe]   ;;  %v2056_v5 = vld [vmem:[%s2151_s21 + $0x34] sm:$0xff]   ;;  %v2057_v10 = vld [vmem:[%s2151_s21 + $0x44] sm:$0xff]   ;;  %s2469_s16 = scalar_lea.vmem %s2492_s3, %s2044_s11 }
  0x12   : > { %v220_v8 = vrot.slane %v2055_v4, 1  ;;  %v221_v9 = vrot.slane %v2056_v5, 1  ;;  %v2059_v11 = vld [vmem:[%s2151_s21 + $0x3c] sm:$0xff]   ;;  %v2058_v12 = vld [vmem:[%s2151_s21 + $0x4c] sm:$0x1f]   ;;  %v225_v14 = vrot.slane %v2057_v10, 1 }
  0x13   : > { %v227_v15 = vrot.slane %v2058_v12, 1  ;;  %v223_v17 = vrot.slane %v2059_v11, 1  ;;  %v2062_v20 = vld [vmem:[%s2151_s21] sm:$0xff]   ;;  %v2063_v21 = vld [vmem:[%s2151_s21 + $0x8] sm:$0xff]   ;;  %v2065_v29 = vld [vmem:[%s2151_s21 + $0x10] sm:$0xff]  }
  0x14   : > { %v222_v13 = vsel %vm219_vm2, %v220_v8, %v221_v9  ;;  %v475_v22 = vshll.u32 %v2062_v20, 16  ;;  %v473_v23 = vshrl.u32 %v2062_v20, 16  ;;  %v480_v26 = vshll.u32 %v2063_v21, 16  ;;  %v2060_v28 = vld [vmem:[%s2151_s21] sm:$0xff]   ;;  %v2203_v39 = vld [vmem:[%s2151_s21 + $0xc] sm:$0xff]   ;;  %v2067_v43 = vld [vmem:[%s2151_s21 + $0x18] sm:$0xff]  }
  0x15   : > { %1846 = vmatmul.mubr.msk.bf16.vlgmr.msra.gmra.mrb[0].mxu0 %vm229_vm3, %v222_v13  ;;  %v228_v18 = vsel %vm219_vm2, %v225_v14, %v227_v15  ;;  %v224_v19 = vsel %vm219_vm2, %v221_v9, %v223_v17  ;;  %v226_v24 = vsel %vm219_vm2, %v223_v17, %v225_v14  ;;  %v488_v34 = vshll.u32 %v2065_v29, 16  ;;  %v1052_v38 = vld [vmem:[%s2151_s21 + $0x4] sm:$0xf]  ;;  %v2061_v40 = vld [vmem:[%s2151_s21 + $0x8] sm:$0xff]   ;;  %v2083_v47 = vld [vmem:[%s2151_s21 + $0x14] sm:$0xff]  }
  0x16   : > { %1888 = vmatpush3.bf16.msra.mxu0 %v527_v6  ;;  %1849 = vmatprep.mubr.msk.bf16.mxu0 %vm2101_vm1, %v2100_v1  ;;  %v477_v25 = vrot.slane %v475_v22, 1  ;;  %v482_v32 = vrot.slane %v480_v26, 1  ;;  %v484_v36 = vshrl.u32 %v2063_v21, 16  ;;  %v1053_v41 = vld [vmem:[%s2151_s21 + $0x8] sm:$0xf]  ;;  %v1097_v46 = vshll.u32 %v2203_v39, 16 }
  0x17   : > { %1931 = vmatprep.subr.bf16.mxu0 %v2100_v1  ;;  %1858 = vmatmul.mubr.msk.bf16.vlgmr.msra.gmra.mrb[0].mxu1 %vm229_vm3, %v228_v18  ;;  %v490_v42 = vrot.slane %v488_v34, 1  ;;  %v1717_v45 = vcombine.low %v1052_v38, %v1053_v41  ;;  %v2084_v48 = vld [vmem:[%s2151_s21 + $0x1c] sm:$0xff]   ;;  %v1101_v52 = vshrl.u32 %v2203_v39, 16  ;;  %v492_v53 = vshrl.u32 %v2065_v29, 16  ;;  %v2221_v60 = vld [vmem:[%s2151_s21 + $0x24] sm:$0x1f]  }
  0x18   : > { %1866 = vmatpush3.bf16.msra.mxu1 %v360_v16  ;;  %1861 = vmatprep.mubr.msk.bf16.mxu1 %vm2101_vm1, %v2100_v1  ;;  %v478_v31 = vor.u32 %v477_v25, %v473_v23  ;;  %v486_v44 = vor.u32 %v484_v36, %v482_v32  ;;  %v1099_v51 = vrot.slane %v1097_v46, 1  ;;  %v496_v54 = vshll.u32 %v2067_v43, 16  ;;  %v2064_v61 = vld [vmem:[%s2151_s21 + $0x10] sm:$0xff]   ;;  %v2069_v6 = vld [vmem:[%s2151_s21 + $0x20] sm:$0x1f]   ;;  %v2066_v20 = vld [vmem:[%s2151_s21 + $0x18] sm:$0xff]  }
  0x19   : > { %1909 = vmatprep.subr.bf16.mxu1 %v2100_v1  ;;  %v1090_v49 = vshrl.u32 %v1717_v45, 16  ;;  %v1092_v50 = vshll.u32 %v1717_v45, 16  ;;  %v1105_v58 = vshll.u32 %v2083_v47, 16  ;;  %v1109_v59 = vshrl.u32 %v2083_v47, 16  ;;  %v1408_v14 = vld [vmem:[%s2151_s21 + $0x4] sm:$0xe] }
  0x1a   : > { %v483_v35 = vsel %vm471_vm4, %v478_v31, %v482_v32  ;;  %v491_v55 = vsel %vm471_vm4, %v486_v44, %v490_v42  ;;  %v1103_v57 = vor.u32 %v1101_v52, %v1099_v51  ;;  %v1113_v0 = vshll.u32 %v2084_v48, 16  ;;  %v2068_v33 = vld [vmem:[%s2151_s21 + $0x20] ss:$0 sps:$4 sm:$0xff]   ;;  %v2296_v44 = vld [vmem:[%s2151_s21 + $0x68] sm:$0xff]  }
  0x1b   : > { %v1094_v56 = vrot.slane %v1092_v50, 1  ;;  %v1107_v63 = vrot.slane %v1105_v58, 1  ;;  %v494_v2 = vor.u32 %v492_v53, %v490_v42  ;;  %v498_v3 = vrot.slane %v496_v54, 1  ;;  %v2279_v36 = vld [vmem:[%s2151_s21 + $0x60] sm:$0xff]   ;;  %v1709_v42 = vld [vmem:[%s2490_s1 + $0x14] sm:$0xf] }
  0x1c   : > { %v1117_v4 = vshrl.u32 %v2084_v48, 16  ;;  %v1121_v5 = vshll.u32 %v2221_v60, 16  ;;  %v1115_v10 = vrot.slane %v1113_v0, 1  ;;  %v500_v16 = vshrl.u32 %v2067_v43, 16  ;;  %v2315_v54 = vld [vmem:[%s2151_s21 + $0x70] sm:$0xff]  }
  0x1d   : > { %1850 = vmatmul.mubr.msk.bf16.gmra.mrb[4].mxu0 %vm229_vm3, %v224_v19  ;;  %v1095_v62 = vor.u32 %v1094_v56, %v1090_v49  ;;  %v2233_v8 = vsel %vm471_vm4, %v1103_v57, %v1107_v63  ;;  %v1111_v9 = vor.u32 %v1109_v59, %v1107_v63  ;;  %v504_v17 = vshll.u32 %v2069_v6, 16  ;;  %v618_v58 = vld [vmem:[%s2151_s21 + $0x78] sm:$0xf]  ;;  %v619_v59 = vld [vmem:[%s2151_s21 + $0x7c] sm:$0x3] }
  0x1e   : > { %1853 = vmatprep.mubr.msk.bf16.mxu0 %vm2101_vm1, %v2100_v1  ;;  %v2235_v11 = vrot.slane %v1121_v5, 1  ;;  %v1119_v13 = vor.u32 %v1117_v4, %v1115_v10  ;;  %v1739_v19 = vcombine.low %v1408_v14, %v1053_v41  ;;  %v1415_v21 = vrot.slane %v2203_v39, 1  ;;  %v2074_v41 = vld [vmem:[%s2151_s21 + $0x8c] sm:$0xff]   ;;  %v2080_v4 = vld [vmem:[%s2151_s21 + $0xa4] sm:$0x7f]  }
  0x1f   : > { %1862 = vmatmul.mubr.msk.bf16.gmra.mrb[4].mxu1 %vm229_vm3, %v227_v15  ;;  %v2230_v7 = vsel %vm471_vm4, %v1095_v62, %v1099_v51  ;;  %v2239_v12 = vsel %vm471_vm4, %v1111_v9, %v1115_v10  ;;  %v499_v15 = vsel %vm471_vm4, %v494_v2, %v498_v3  ;;  %v502_v23 = vor.u32 %v500_v16, %v498_v3  ;;  %v2076_v51 = vld [vmem:[%s2151_s21 + $0x94] sm:$0xff]  }
  0x20   : > { %1867 = vmatprep.mubr.msk.bf16.mxu1 %vm2101_vm1, %v2100_v1  ;;  %v2247_v18 = vsel %vm471_vm4, %v1119_v13, %v2235_v11  ;;  %v1414_v22 = vrot.slane %v1739_v19, 1  ;;  %v1417_v25 = vrot.slane %v2083_v47, 1  ;;  %v1421_v29 = vrot.slane %v2221_v60, 1 }
  0x21   : > { %v508_v34 = vshrl.u32 %v2069_v6, 16  ;;  %v649_v39 = vrot.slane %v2279_v36, 2  ;;  %v969_v45 = vsel %vm245_vm0, %v1709_v42, 0  ;;  %v795_v47 = vrot.slane %v2074_v41, 3 }
  0x22   : > { %v2255_v26 = vsel %vm219_vm2, %v1414_v22, %v1415_v21  ;;  %v2259_v27 = vsel %vm219_vm2, %v1415_v21, %v1417_v25  ;;  %v651_v49 = vrot.slane %v2296_v44, 2  ;;  %v653_v56 = vrot.slane %v2315_v54, 2 }
  0x23   : > { %v1692_v63 = vcombine.low %v618_v58, %v619_v59  ;;  %v801_v6 = vrot.slane %v2080_v4, 3  ;;  %v918_v13 = vshrl.u32 %v2279_v36, 16  ;;  %v921_v14 = vshll.u32 %v2279_v36, 16 }
  0x24   : > { %v652_v53 = vsel %vm647_vm5, %v649_v39, %v651_v49  ;;  %v654_v62 = vsel %vm647_vm5, %v651_v49, %v653_v56 }
  0x25   : > { %1854 = vmatmul.mubr.msk.bf16.gmra.mrb[8].mxu0 %vm229_vm3, %v226_v24  ;;  %v506_v24 = vrot.slane %v504_v17, 1  ;;  %v655_v2 = vrot.slane %v1692_v63, 2  ;;  %v920_v19 = vrot.slane %v918_v13, 2 }
  0x26   : > { %1889 = vmatprep.mubr.msk.bf16.mxu0 %vm2101_vm1, %v2100_v1 }
  0x27   : > { %1868 = vmatmul.mubr.msk.bf16.vlgmr.msra.gmra.mrb[8].mxu1 %vm229_vm3, %v2060_v28  ;;  %v1419_v28 = vrot.slane %v2084_v48, 1  ;;  %v1716_v48 = vld [vmem:[%s2490_s1 + $0x18] sm:$0xf]  ;;  %v656_v5 = vsel %vm647_vm5, %v653_v56, %v655_v2 }
  0x28   : > { %1910 = vmatpush3.bf16.msra.mxu1 %v673_v30  ;;  %1871 = vmatprep.mubr.msk.bf16.mxu1 %vm2101_vm1, %v2100_v1  ;;  %v507_v30 = vsel %vm471_vm4, %v502_v23, %v506_v24  ;;  %v1144_v52 = vsel %vm245_vm0, %v1716_v48, 0  ;;  %v927_v23 = vshrl.u32 %v2296_v44, 16 }
  0x29   : > { %1953 = vmatprep.subr.bf16.mxu1 %v2100_v1  ;;  %v2266_v31 = vsel %vm219_vm2, %v1417_v25, %v1419_v28  ;;  %v2271_v32 = vsel %vm219_vm2, %v1419_v28, %v1421_v29  ;;  %v1727_v25 = vld [vmem:[%s2490_s1 + $0x1c] sm:$0xf] }
  0x2d   : > { %1890 = vmatmul.mubr.msk.bf16.vlgmr.msra.gmra.mrb[12].mxu0 %vm229_vm3, %v483_v35  ;;  %v2276_v35 = vld [vmem:[%s2151_s21 + $0x58] sm:$0xfc]  }
  0x2e   : > { %1932 = vmatpush3.bf16.msra.mxu0 %v819_v37  ;;  %1893 = vmatprep.mubr.msk.bf16.mxu0 %vm2101_vm1, %v2100_v1  ;;  %v510_v37 = vor.u32 %v508_v34, %v506_v24  ;;  %v648_v38 = vrot.slane %v2276_v35, 2  ;;  %v910_v9 = vshrl.u32 %v2276_v35, 16  ;;  %v913_v10 = vshll.u32 %v2276_v35, 16  ;;  %v1738_v35 = vld [vmem:[%s2490_s1 + $0x20] sm:$0xf] }
  0x2f   : > { %1975 = vmatprep.subr.bf16.mxu0 %v2100_v1  ;;  %1872 = vmatmul.mubr.msk.bf16.gmra.mrb[12].mxu1 %vm229_vm3, %v2061_v40  ;;  %v2073_v40 = vld [vmem:[%s2151_s21 + $0x84] sm:$0xf8]   ;;  %v930_v24 = vshll.u32 %v2296_v44, 16  ;;  %v1325_v34 = vsel %vm245_vm0, %v1727_v25, 0 }
  0x30   : > { %1875 = vmatprep.mubr.msk.bf16.mxu1 %vm2101_vm1, %v2100_v1  ;;  %v650_v43 = vsel %vm647_vm5, %v648_v38, %v649_v39  ;;  %v794_v46 = vrot.slane %v2073_v40, 3  ;;  %v912_v16 = vrot.slane %v910_v9, 2  ;;  %v915_v17 = vrot.slane %v913_v10, 3  ;;  %v902_v39 = vld [vmem:[%s2151_s21 + $0x7c] sm:$0x7]  ;;  %v2090_v9 = vld [vmem:[%s2151_s21 + $0x48] sm:$0xff]  }
  0x31   : > { %v939_v38 = vshll.u32 %v2315_v54, 16  ;;  %v1439_v40 = vsel %vm245_vm0, %v1738_v35, 0  ;;  %v1710_v41 = vcombine.low %v618_v58, %v902_v39  ;;  %v1292_v10 = vshrl.u32 %v2090_v9, 16 }
  0x32   : > { %v796_v50 = vsel %vm793_vm6, %v794_v46, %v795_v47  ;;  %v916_v21 = vor.u32 %v915_v17, %v912_v16  ;;  %v1295_v13 = vshll.u32 %v2090_v9, 16  ;;  %v2091_v17 = vld [vmem:[%s2151_s21 + $0x50] sm:$0x3f]  }
  0x33   : > { %v941_v44 = vrot.slane %v939_v38, 3  ;;  %v945_v46 = vshrl.u32 %v1710_v41, 16 }
  0x34   : > { %v1297_v16 = vrot.slane %v1295_v13, 2 }
  0x35   : > { %1894 = vmatmul.mubr.msk.bf16.gmra.mrb[16].mxu0 %vm229_vm3, %v491_v55  ;;  %v797_v55 = vrot.slane %v2076_v51, 3 }
  0x36   : > { %1897 = vmatprep.mubr.msk.bf16.mxu0 %vm2101_vm1, %v2100_v1 }
  0x37   : > { %1876 = vmatmul.mubr.msk.bf16.gmra.mrb[16].mxu1 %vm229_vm3, %v2064_v61  ;;  %v798_v57 = vsel %vm793_vm6, %v795_v47, %v797_v55  ;;  %v2079_v61 = vld [vmem:[%s2151_s21 + $0x9c] sm:$0xff]   ;;  %v948_v47 = vshll.u32 %v1710_v41, 16 }
  0x38   : > { %1879 = vmatprep.mubr.msk.bf16.mxu1 %vm2101_vm1, %v2100_v1  ;;  %v799_v0 = vrot.slane %v2079_v61, 3 }
  0x39   : > { %v950_v49 = vrot.slane %v948_v47, 3 }
  0x3a   : > { %v800_v3 = vsel %vm793_vm6, %v797_v55, %v799_v0 }
  0x3d   : > { %1898 = vmatmul.mubr.msk.bf16.gmra.mrb[20].mxu0 %vm229_vm3, %v499_v15  ;;  %v802_v15 = vsel %vm793_vm6, %v799_v0, %v801_v6 }
  0x3e   : > { %1901 = vmatprep.mubr.msk.bf16.mxu0 %vm2101_vm1, %v2100_v1 }
  0x3f   : > { %1880 = vmatmul.mubr.msk.bf16.gmra.mrb[20].mxu1 %vm229_vm3, %v2066_v20  ;;  %v923_v20 = vrot.slane %v921_v14, 3 }
  0x40   : > { %1883 = vmatprep.mubr.msk.bf16.mxu1 %vm2101_vm1, %v2100_v1 }
  0x41   : > { %v924_v22 = vor.u32 %v923_v20, %v920_v19  ;;  %v1301_v20 = vshrl.u32 %v2091_v17, 16 }
  0x43   : > { %v925_v28 = vsel %vm908_vm7, %v916_v21, %v924_v22  ;;  %v1304_v21 = vshll.u32 %v2091_v17, 16 }
  0x45   : > { %1902 = vmatmul.mubr.msk.bf16.gmra.mrb[24].mxu0 %vm229_vm3, %v507_v30  ;;  %v929_v30 = vrot.slane %v927_v23, 2  ;;  %v1306_v23 = vrot.slane %v1304_v21, 2 }
  0x46   : > { %1905 = vmatprep.mubr.msk.bf16.mxu0 %vm2101_vm1, %v2100_v1 }
  0x47   : > { %1884 = vmatmul.mubr.msk.bf16.gmra.mrb[24].mxu1 %vm229_vm3, %v2068_v33  ;;  %v932_v33 = vrot.slane %v930_v24, 3 }
  0x48   : > { %1911 = vmatprep.mubr.msk.bf16.mxu1 %vm2101_vm1, %v2100_v1 }
  0x49   : > { %v933_v36 = vor.u32 %v932_v33, %v929_v30 }
  0x4b   : > { %v934_v42 = vsel %vm908_vm7, %v924_v22, %v933_v36 }
  0x4d   : > { %1906 = vmatmul.mubr.msk.bf16.gmra.mrb[28].mxu0 %vm229_vm3, %v510_v37  ;;  %v936_v37 = vshrl.u32 %v2315_v54, 16 }
  0x4e   : > { %1933 = vmatprep.mubr.msk.bf16.mxu0 %vm2101_vm1, %v2100_v1 }
  0x4f   : > { %1912 = vmatmul.mubr.msk.bf16.vlgmr.msra.gmra.mrb[28].mxu1 %vm229_vm3, %v650_v43  ;;  %v938_v43 = vrot.slane %v936_v37, 2 }
  0x50   : > { %1954 = vmatpush3.bf16.msra.mxu1 %v969_v45  ;;  %1915 = vmatprep.mubr.msk.bf16.mxu1 %vm2101_vm1, %v2100_v1 }
  0x51   : > { %1997 = vmatprep.subr.bf16.mxu1 %v2100_v1  ;;  %v942_v45 = vor.u32 %v941_v44, %v938_v43 }
  0x53   : > { %v943_v48 = vsel %vm908_vm7, %v933_v36, %v942_v45 }
  0x55   : > { %1934 = vmatmul.mubr.msk.bf16.vlgmr.msra.gmra.mrb[32].mxu0 %vm229_vm3, %v796_v50 }
  0x56   : > { %1976 = vmatpush3.bf16.msra.mxu0 %v1144_v52  ;;  %1937 = vmatprep.mubr.msk.bf16.mxu0 %vm2101_vm1, %v2100_v1  ;;  %v2086_v52 = vld [vmem:[%s2151_s21 + $0x30] sm:$0xfe]  }
  0x57   : > { %2019 = vmatprep.subr.bf16.mxu0 %v2100_v1  ;;  %1916 = vmatmul.mubr.msk.bf16.gmra.mrb[32].mxu1 %vm229_vm3, %v652_v53  ;;  %v2087_v53 = vld [vmem:[%s2151_s21 + $0x38] sm:$0xff]   ;;  %v1269_v54 = vshll.u32 %v2086_v52, 16 }
  0x58   : > { %1919 = vmatprep.mubr.msk.bf16.mxu1 %vm2101_vm1, %v2100_v1  ;;  %v1274_v55 = vshrl.u32 %v2087_v53, 16  ;;  %v1277_v56 = vshll.u32 %v2087_v53, 16 }
  0x59   : > { %v1271_v58 = vrot.slane %v1269_v54, 2 }
  0x5a   : > { %v1276_v59 = vrot.slane %v1274_v55, 1  ;;  %v1279_v61 = vrot.slane %v1277_v56, 2 }
  0x5d   : > { %1938 = vmatmul.mubr.msk.bf16.gmra.mrb[36].mxu0 %vm229_vm3, %v798_v57  ;;  %v1125_v57 = vshrl.u32 %v2221_v60, 16 }
  0x5e   : > { %1941 = vmatprep.mubr.msk.bf16.mxu0 %vm2101_vm1, %v2100_v1 }
  0x5f   : > { %1920 = vmatmul.mubr.msk.bf16.gmra.mrb[36].mxu1 %vm229_vm3, %v654_v62  ;;  %v2088_v62 = vld [vmem:[%s2151_s21 + $0x40] sm:$0xff]   ;;  %v1127_v63 = vor.u32 %v1125_v57, %v2235_v11 }
  0x60   : > { %1923 = vmatprep.mubr.msk.bf16.mxu1 %vm2101_vm1, %v2100_v1 }
  0x65   : > { %1942 = vmatmul.mubr.msk.bf16.gmra.mrb[40].mxu0 %vm229_vm3, %v800_v3  ;;  %v1283_v3 = vshrl.u32 %v2088_v62, 16 }
  0x66   : > { %1945 = vmatprep.mubr.msk.bf16.mxu0 %vm2101_vm1, %v2100_v1 }
  0x67   : > { %1924 = vmatmul.mubr.msk.bf16.gmra.mrb[40].mxu1 %vm229_vm3, %v656_v5  ;;  %v1285_v5 = vrot.slane %v1283_v3, 1 }
  0x68   : > { %1927 = vmatprep.mubr.msk.bf16.mxu1 %vm2101_vm1, %v2100_v1 }
  0x6d   : > { %1946 = vmatmul.mubr.msk.bf16.gmra.mrb[44].mxu0 %vm229_vm3, %v802_v15  ;;  %v1294_v15 = vrot.slane %v1292_v10, 1 }
  0x6e   : > { %1949 = vmatprep.mubr.msk.bf16.mxu0 %vm2101_vm1, %v2100_v1 }
  0x6f   : > { %1928 = vmatmul.mubr.msk.bf16.gmra.mrb[44].mxu1 %vm229_vm3, %v655_v2  ;;  %v1280_v2 = vor.u32 %v1279_v61, %v1276_v59  ;;  %v1298_v19 = vor.u32 %v1297_v16, %v1294_v15 }
  0x70   : > { %1955 = vmatprep.mubr.msk.bf16.mxu1 %vm2101_vm1, %v2100_v1 }
  0x75   : > { %1950 = vmatmul.mubr.msk.bf16.gmra.mrb[48].mxu0 %vm229_vm3, %v801_v6 }
  0x76   : > { %1977 = vmatprep.mubr.msk.bf16.mxu0 %vm2101_vm1, %v2100_v1 }
  0x77   : > { %1956 = vmatmul.mubr.msk.bf16.vlgmr.msra.gmra.mrb[48].mxu1 %vm229_vm3, %v925_v28 }
  0x78   : > { %1998 = vmatpush3.bf16.msra.mxu1 %v1325_v34  ;;  %1959 = vmatprep.mubr.msk.bf16.mxu1 %vm2101_vm1, %v2100_v1 }
  0x7d   : > { %1978 = vmatmul.mubr.msk.bf16.vlgmr.msra.gmra.mrb[52].mxu0 %vm229_vm3, %v2230_v7  ;;  %v947_v7 = vrot.slane %v945_v46, 2 }
  0x7e   : > { %2020 = vmatpush3.bf16.msra.mxu0 %v1439_v40  ;;  %1981 = vmatprep.mubr.msk.bf16.mxu0 %vm2101_vm1, %v2100_v1 }
  0x7f   : > { %1960 = vmatmul.mubr.msk.bf16.gmra.mrb[52].mxu1 %vm229_vm3, %v934_v42  ;;  %v951_v50 = vor.u32 %v950_v49, %v947_v7 }
  0x80   : > { %1963 = vmatprep.mubr.msk.bf16.mxu1 %vm2101_vm1, %v2100_v1 }
  0x81   : > { %v952_v51 = vsel %vm908_vm7, %v942_v45, %v951_v50 }
  0x85   : > { %1982 = vmatmul.mubr.msk.bf16.gmra.mrb[56].mxu0 %vm229_vm3, %v2233_v8  ;;  %v1266_v8 = vshrl.u32 %v2086_v52, 16 }
  0x86   : > { %1985 = vmatprep.mubr.msk.bf16.mxu0 %vm2101_vm1, %v2100_v1 }
  0x87   : > { %1964 = vmatmul.mubr.msk.bf16.gmra.mrb[56].mxu1 %vm229_vm3, %v943_v48 }
  0x88   : > { %1967 = vmatprep.mubr.msk.bf16.mxu1 %vm2101_vm1, %v2100_v1 }
  0x8d   : > { %1986 = vmatmul.mubr.msk.bf16.gmra.mrb[60].mxu0 %vm229_vm3, %v2239_v12  ;;  %v1268_v12 = vrot.slane %v1266_v8, 1 }
  0x8e   : > { %1989 = vmatprep.mubr.msk.bf16.mxu0 %vm2101_vm1, %v2100_v1 }
  0x8f   : > { %1968 = vmatmul.mubr.msk.bf16.gmra.mrb[60].mxu1 %vm229_vm3, %v952_v51  ;;  %v1272_v0 = vor.u32 %v1271_v58, %v1268_v12 }
  0x90   : > { %1971 = vmatprep.mubr.msk.bf16.mxu1 %vm2101_vm1, %v2100_v1 }
  0x91   : > { %v1281_v4 = vsel %vm1264_vm8, %v1272_v0, %v1280_v2 }
  0x95   : > { %1990 = vmatmul.mubr.msk.bf16.gmra.mrb[64].mxu0 %vm229_vm3, %v2247_v18  ;;  %v1286_v18 = vshll.u32 %v2088_v62, 16 }
  0x96   : > { %1993 = vmatprep.mubr.msk.bf16.mxu0 %vm2101_vm1, %v2100_v1 }
  0x97   : > { %1972 = vmatmul.mubr.msk.bf16.gmra.mrb[64].mxu1 %vm229_vm3, %v951_v50  ;;  %v1288_v6 = vrot.slane %v1286_v18, 2 }
  0x98   : > { %1999 = vmatprep.mubr.msk.bf16.mxu1 %vm2101_vm1, %v2100_v1 }
  0x99   : > { %v1289_v11 = vor.u32 %v1288_v6, %v1285_v5 }
  0x9b   : > { %v1290_v14 = vsel %vm1264_vm8, %v1280_v2, %v1289_v11  ;;  %v1299_v22 = vsel %vm1264_vm8, %v1289_v11, %v1298_v19 }
  0x9d   : > { %1994 = vmatmul.mubr.msk.bf16.gmra.mrb[68].mxu0 %vm229_vm3, %v1127_v63 }
  0x9e   : > { %2021 = vmatprep.mubr.msk.bf16.mxu0 %vm2101_vm1, %v2100_v1 }
  0x9f   : > { %2000 = vmatmul.mubr.msk.bf16.vlgmr.msra.gmra.mrb[68].mxu1 %vm229_vm3, %v1281_v4 }
  0xa0   : > { %2003 = vmatprep.mubr.msk.bf16.mxu1 %vm2101_vm1, %v2100_v1 }
  0xa5   : > { %2022 = vmatmul.mubr.msk.bf16.vlgmr.msra.gmra.mrb[72].mxu0 %vm229_vm3, %v2255_v26  ;;  %v1303_v26 = vrot.slane %v1301_v20, 1 }
  0xa6   : > { %2025 = vmatprep.mubr.msk.bf16.mxu0 %vm2101_vm1, %v2100_v1 }
  0xa7   : > { %2004 = vmatmul.mubr.msk.bf16.gmra.mrb[72].mxu1 %vm229_vm3, %v1290_v14  ;;  %v1307_v24 = vor.u32 %v1306_v23, %v1303_v26 }
  0xa8   : > { %2007 = vmatprep.mubr.msk.bf16.mxu1 %vm2101_vm1, %v2100_v1 }
  0xa9   : > { %v1308_v25 = vsel %vm1264_vm8, %v1298_v19, %v1307_v24 }
  0xad   : > { %2026 = vmatmul.mubr.msk.bf16.gmra.mrb[76].mxu0 %vm229_vm3, %v2259_v27 }
  0xae   : > { %2029 = vmatprep.mubr.msk.bf16.mxu0 %vm2101_vm1, %v2100_v1 }
  0xaf   : > { %2008 = vmatmul.mubr.msk.bf16.gmra.mrb[76].mxu1 %vm229_vm3, %v1299_v22 }
  0xb0   : > { %2011 = vmatprep.mubr.msk.bf16.mxu1 %vm2101_vm1, %v2100_v1 }
  0xb5   : > { %2030 = vmatmul.mubr.msk.bf16.gmra.mrb[80].mxu0 %vm229_vm3, %v2266_v31 }
  0xb6   : > { %2033 = vmatprep.mubr.msk.bf16.mxu0 %vm2101_vm1, %v2100_v1 }
  0xb7   : > { %2012 = vmatmul.mubr.msk.bf16.gmra.mrb[80].mxu1 %vm229_vm3, %v1308_v25 }
  0xb8   : > { %2015 = vmatprep.mubr.msk.bf16.mxu1 %vm2101_vm1, %v2100_v1 }
  0xbd   : > { %2034 = vmatmul.mubr.msk.bf16.gmra.mrb[84].mxu0 %vm229_vm3, %v2271_v32 }
  0xbe   : > { %2037 = vmatprep.mubr.msk.bf16.mxu0 %vm2101_vm1, %v2100_v1 }
  0xbf   : > { %2016 = vmatmul.mubr.msk.bf16.gmra.mrb[84].mxu1 %vm229_vm3, %v1307_v24 }
  0xc5   : > { %2038 = vmatmul.mubr.msk.bf16.gmra.mrb[88].mxu0 %vm229_vm3, %v1421_v29 }
  0xe8   : > { %v283_v27 = vpop.f32.mrb[0].mxu0 }
  0xe9   : > { %v1847_v31 = vpop.f32.mrb[1].mxu0 }
  0xea   : > { %v286_v28 = vpop.f32.mrb[2].mxu0  ;;  %v307_v33 = vpop.f32.mrb[0].mxu1 }
  0xeb   : > { %v1848_v30 = vpop.f32.mrb[3].mxu0  ;;  %v1859_v34 = vpop.f32.mrb[1].mxu1 }
  0xec   : > { %v310_v35 = vpop.f32.mrb[2].mxu1 }
  0xed   : > { %v1860_v36 = vpop.f32.mrb[3].mxu1 }
  0xf0   : > { %v291_v37 = vpop.f32.mrb[4].mxu0 }
  0xf1   : > { %v1851_v38 = vpop.f32.mrb[5].mxu0 }
  0xf2   : > { %v294_v32 = vpop.f32.mrb[6].mxu0  ;;  %v315_v40 = vpop.f32.mrb[4].mxu1 }
  0xf3   : > { %v1852_v39 = vpop.f32.mrb[7].mxu0  ;;  %v1863_v1 = vpop.f32.mrb[5].mxu1 }
  0xf4   : > { %v318_v41 = vpop.f32.mrb[6].mxu1 }
  0xf5   : > { %v1864_v42 = vpop.f32.mrb[7].mxu1 }
  0xf8   : > { %v299_v43 = vpop.f32.mrb[8].mxu0 }
  0xf9   : > { %v1855_v60 = vpop.f32.mrb[9].mxu0 }
  0xfa   : > { %v302_v44 = vpop.f32.mrb[10].mxu0  ;;  %v396_v29 = vpop.f32.mrb[8].mxu1 }
  0xfb   : > { %v1856_v45 = vpop.f32.mrb[11].mxu0  ;;  %v397_v46 = vadd.f32 %v396_v29, %v283_v27  ;;  %v1869_v47 = vpop.f32.mrb[9].mxu1 }
  0xfc   : > { %v399_v48 = vpop.f32.mrb[10].mxu1 }
  0xfd   : > { %v400_v7 = vadd.f32 %v399_v48, %v286_v28  ;;  %v1870_v49 = vpop.f32.mrb[11].mxu1 }
 0x100   : > { %v563_v50 = vpop.f32.mrb[12].mxu0 }
 0x101   : > { %v601_v51 = vadd.f32 %v563_v50, %v397_v46  ;;  %v1891_v52 = vpop.f32.mrb[13].mxu0 }
 0x102   : > { %v566_v53 = vpop.f32.mrb[14].mxu0  ;;  %v404_v8 = vpop.f32.mrb[12].mxu1 }
 0x103   : > { %v602_v54 = vadd.f32 %v566_v53, %v400_v7  ;;  %v1892_v55 = vpop.f32.mrb[15].mxu0  ;;  %v405_v56 = vadd.f32 %v404_v8, %v291_v37  ;;  %v1873_v57 = vpop.f32.mrb[13].mxu1 }
 0x104   : > { %v407_v12 = vpop.f32.mrb[14].mxu1 }
 0x105   : > { %v408_v58 = vadd.f32 %v407_v12, %v294_v32  ;;  %v1874_v59 = vpop.f32.mrb[15].mxu1 }
 0x108   : > { %v571_v61 = vpop.f32.mrb[16].mxu0 }
 0x109   : > { %v603_v62 = vadd.f32 %v571_v61, %v405_v56  ;;  %v1895_v63 = vpop.f32.mrb[17].mxu0 }
 0x10a   : > { %v574_v0 = vpop.f32.mrb[18].mxu0  ;;  %v412_v2 = vpop.f32.mrb[16].mxu1 }
 0x10b   : > { %v604_v3 = vadd.f32 %v574_v0, %v408_v58  ;;  %v1896_v18 = vpop.f32.mrb[19].mxu0  ;;  %v413_v4 = vadd.f32 %v412_v2, %v299_v43  ;;  %v1877_v5 = vpop.f32.mrb[17].mxu1 }
 0x10c   : > { %v415_v6 = vpop.f32.mrb[18].mxu1 }
 0x10d   : > { %v416_v9 = vadd.f32 %v415_v6, %v302_v44  ;;  %v1878_v11 = vpop.f32.mrb[19].mxu1 }
 0x110   : > { %v579_v10 = vpop.f32.mrb[20].mxu0 }
 0x111   : > { %v605_v13 = vadd.f32 %v579_v10, %v413_v4  ;;  %v1899_v14 = vpop.f32.mrb[21].mxu0 }
 0x112   : > { %v582_v15 = vpop.f32.mrb[22].mxu0  ;;  %v420_v16 = vpop.f32.mrb[20].mxu1 }
 0x113   : > { %v606_v17 = vadd.f32 %v582_v15, %v416_v9  ;;  %v1900_v19 = vpop.f32.mrb[23].mxu0  ;;  %v421_v20 = vadd.f32 %v420_v16, %v307_v33  ;;  %v1881_v21 = vpop.f32.mrb[21].mxu1 }
 0x114   : > { %v423_v22 = vpop.f32.mrb[22].mxu1 }
 0x115   : > { %v424_v26 = vadd.f32 %v423_v22, %v310_v35  ;;  %v1882_v23 = vpop.f32.mrb[23].mxu1 }
 0x118   : > { %v587_v24 = vpop.f32.mrb[24].mxu0 }
 0x119   : > { %v607_v25 = vadd.f32 %v587_v24, %v421_v20  ;;  %v1903_v27 = vpop.f32.mrb[25].mxu0 }
 0x11a   : > { %v590_v31 = vpop.f32.mrb[26].mxu0  ;;  %v428_v28 = vpop.f32.mrb[24].mxu1 }
 0x11b   : > { %v608_v30 = vadd.f32 %v590_v31, %v424_v26  ;;  %v1904_v34 = vpop.f32.mrb[27].mxu0  ;;  %v429_v36 = vadd.f32 %v428_v28, %v315_v40  ;;  %v1885_v37 = vpop.f32.mrb[25].mxu1 }
 0x11c   : > { %v431_v38 = vpop.f32.mrb[26].mxu1 }
 0x11d   : > { %v1886_v32 = vpop.f32.mrb[27].mxu1 }
 0x120   : > { %v595_v39 = vpop.f32.mrb[28].mxu0 }
 0x121   : > { %v609_v1 = vadd.f32 %v595_v39, %v429_v36  ;;  %v1907_v41 = vpop.f32.mrb[29].mxu0 }
 0x122   : > { %v598_v42 = vpop.f32.mrb[30].mxu0  ;;  %v709_v33 = vpop.f32.mrb[28].mxu1 }
 0x123   : > { %v1908_v43 = vpop.f32.mrb[31].mxu0  ;;  %v747_v60 = vadd.f32 %v709_v33, %v601_v51  ;;  %v1913_v35 = vpop.f32.mrb[29].mxu1 }
 0x124   : > { %v712_v44 = vpop.f32.mrb[30].mxu1 }
 0x125   : > { %v748_v29 = vadd.f32 %v712_v44, %v602_v54  ;;  %v1914_v45 = vpop.f32.mrb[31].mxu1 }
 0x128   : > { %v855_v46 = vpop.f32.mrb[32].mxu0 }
 0x129   : > { %v893_v47 = vadd.f32 %v855_v46, %v747_v60  ;;  %v1935_v48 = vpop.f32.mrb[33].mxu0 }
 0x12a   : > { %v858_v7 = vpop.f32.mrb[34].mxu0  ;;  %v717_v49 = vpop.f32.mrb[32].mxu1 }
 0x12b   : > { %v894_v40 = vadd.f32 %v858_v7, %v748_v29  ;;  %v1936_v50 = vpop.f32.mrb[35].mxu0  ;;  %v749_v52 = vadd.f32 %v717_v49, %v603_v62  ;;  %v1917_v53 = vpop.f32.mrb[33].mxu1 }
 0x12c   : > { %v720_v8 = vpop.f32.mrb[34].mxu1 }
 0x12d   : > { %v750_v55 = vadd.f32 %v720_v8, %v604_v3  ;;  %v1918_v56 = vpop.f32.mrb[35].mxu1 }
 0x130   : > { %v863_v57 = vpop.f32.mrb[36].mxu0 }
 0x131   : > { %v895_v12 = vadd.f32 %v863_v57, %v749_v52  ;;  %v1939_v58 = vpop.f32.mrb[37].mxu0 }
 0x132   : > { %v866_v51 = vpop.f32.mrb[38].mxu0  ;;  %v725_v59 = vpop.f32.mrb[36].mxu1 }
 0x133   : > { %v896_v61 = vadd.f32 %v866_v51, %v750_v55  ;;  %v1940_v54 = vpop.f32.mrb[39].mxu0  ;;  %v751_v63 = vadd.f32 %v725_v59, %v605_v13  ;;  %v1921_v0 = vpop.f32.mrb[37].mxu1 }
 0x134   : > { %v728_v2 = vpop.f32.mrb[38].mxu1 }
 0x135   : > { %v752_v18 = vadd.f32 %v728_v2, %v606_v17  ;;  %v1922_v4 = vpop.f32.mrb[39].mxu1 }
 0x138   : > { %v871_v5 = vpop.f32.mrb[40].mxu0 }
 0x139   : > { %v897_v6 = vadd.f32 %v871_v5, %v751_v63  ;;  %v1943_v9 = vpop.f32.mrb[41].mxu0 }
 0x13a   : > { %v874_v62 = vpop.f32.mrb[42].mxu0  ;;  %v733_v11 = vpop.f32.mrb[40].mxu1 }
 0x13b   : > { %v898_v10 = vadd.f32 %v874_v62, %v752_v18  ;;  %v1944_v3 = vpop.f32.mrb[43].mxu0  ;;  %v753_v14 = vadd.f32 %v733_v11, %v607_v25  ;;  %v1925_v15 = vpop.f32.mrb[41].mxu1 }
 0x13c   : > { %v736_v16 = vpop.f32.mrb[42].mxu1 }
 0x13d   : > { %v754_v19 = vadd.f32 %v736_v16, %v608_v30  ;;  %v1926_v20 = vpop.f32.mrb[43].mxu1 }
 0x140   : > { %v879_v21 = vpop.f32.mrb[44].mxu0 }
 0x141   : > { %v899_v22 = vadd.f32 %v879_v21, %v753_v14  ;;  %v1947_v26 = vpop.f32.mrb[45].mxu0 }
 0x142   : > { %v882_v13 = vpop.f32.mrb[46].mxu0  ;;  %v741_v23 = vpop.f32.mrb[44].mxu1 }
 0x143   : > { %v900_v24 = vadd.f32 %v882_v13, %v754_v19  ;;  %v1948_v17 = vpop.f32.mrb[47].mxu0  ;;  %v755_v27 = vadd.f32 %v741_v23, %v609_v1  ;;  %v1929_v31 = vpop.f32.mrb[45].mxu1 }
 0x144   : > { %v744_v28 = vpop.f32.mrb[46].mxu1 }
 0x145   : > { %v1930_v34 = vpop.f32.mrb[47].mxu1 }
 0x148   : > { %v887_v36 = vpop.f32.mrb[48].mxu0 }
 0x149   : > { %v901_v37 = vadd.f32 %v887_v36, %v755_v27  ;;  %v1951_v38 = vpop.f32.mrb[49].mxu0 }
 0x14a   : > { %v890_v32 = vpop.f32.mrb[50].mxu0  ;;  %v1005_v25 = vpop.f32.mrb[48].mxu1 }
 0x14b   : > { %v1952_v39 = vpop.f32.mrb[51].mxu0  ;;  %v1043_v41 = vadd.f32 %v1005_v25, %v893_v47  ;;  %v1957_v30 = vpop.f32.mrb[49].mxu1 }
 0x14c   : > { %v1008_v42 = vpop.f32.mrb[50].mxu1 }
 0x14d   : > { %v1044_v33 = vadd.f32 %v1008_v42, %v894_v40  ;;  %v1958_v43 = vpop.f32.mrb[51].mxu1 }
 0x150   : > { %v1180_v60 = vpop.f32.mrb[52].mxu0 }
 0x151   : > { %v1218_v35 = vadd.f32 %v1180_v60, %v1043_v41  ;;  %v1979_v44 = vpop.f32.mrb[53].mxu0 }
 0x152   : > { %v1183_v29 = vpop.f32.mrb[54].mxu0  ;;  %v1013_v45 = vpop.f32.mrb[52].mxu1 }
 0x153   : > { %v1219_v1 = vadd.f32 %v1183_v29, %v1044_v33  ;;  %v1980_v46 = vpop.f32.mrb[55].mxu0  ;;  %v1045_v48 = vadd.f32 %v1013_v45, %v895_v12  ;;  %v1961_v7 = vpop.f32.mrb[53].mxu1 }
 0x154   : > { %v1016_v49 = vpop.f32.mrb[54].mxu1 }
 0x155   : > { %v1046_v50 = vadd.f32 %v1016_v49, %v896_v61  ;;  %v1962_v52 = vpop.f32.mrb[55].mxu1 }
 0x158   : > { %v1188_v53 = vpop.f32.mrb[56].mxu0 }
 0x159   : > { %v1220_v8 = vadd.f32 %v1188_v53, %v1045_v48  ;;  %v1983_v55 = vpop.f32.mrb[57].mxu0 }
 0x15a   : > { %v1191_v47 = vpop.f32.mrb[58].mxu0  ;;  %v1021_v56 = vpop.f32.mrb[56].mxu1 }
 0x15b   : > { %v1221_v57 = vadd.f32 %v1191_v47, %v1046_v50  ;;  %v1984_v40 = vpop.f32.mrb[59].mxu0  ;;  %v1047_v58 = vadd.f32 %v1021_v56, %v897_v6  ;;  %v1965_v51 = vpop.f32.mrb[57].mxu1 }
 0x15c   : > { %v1024_v59 = vpop.f32.mrb[58].mxu1 }
 0x15d   : > { %v1048_v54 = vadd.f32 %v1024_v59, %v898_v10  ;;  %v1966_v63 = vpop.f32.mrb[59].mxu1 }
 0x160   : > { %v1196_v0 = vpop.f32.mrb[60].mxu0 }
 0x161   : > { %v1222_v2 = vadd.f32 %v1196_v0, %v1047_v58  ;;  %v1987_v18 = vpop.f32.mrb[61].mxu0 }
 0x162   : > { %v1199_v12 = vpop.f32.mrb[62].mxu0  ;;  %v1029_v4 = vpop.f32.mrb[60].mxu1 }
 0x163   : > { %v1223_v5 = vadd.f32 %v1199_v12, %v1048_v54  ;;  %v1988_v61 = vpop.f32.mrb[63].mxu0  ;;  %v1049_v9 = vadd.f32 %v1029_v4, %v899_v22  ;;  %v1969_v62 = vpop.f32.mrb[61].mxu1 }
 0x164   : > { %v1032_v11 = vpop.f32.mrb[62].mxu1 }
 0x165   : > { %v1050_v3 = vadd.f32 %v1032_v11, %v900_v24  ;;  %v1970_v14 = vpop.f32.mrb[63].mxu1 }
 0x168   : > { %v1204_v15 = vpop.f32.mrb[64].mxu0 }
 0x169   : > { %v2452_v16 = vadd.f32 %v1204_v15, %v1049_v9  ;;  %v1991_v6 = vpop.f32.mrb[65].mxu0 }
 0x16a   : > { %v1207_v19 = vpop.f32.mrb[66].mxu0  ;;  %v1037_v20 = vpop.f32.mrb[64].mxu1 }
 0x16b   : > { %v2454_v10 = vadd.f32 %v1207_v19, %v1050_v3  ;;  %v1992_v21 = vpop.f32.mrb[67].mxu0  ;;  %v1051_v26 = vadd.f32 %v1037_v20, %v901_v37  ;;  %v1973_v13 = vpop.f32.mrb[65].mxu1  ;;  %v2461_v37 = vld [vmem:[%s2491_s2] ss:$0 sm:$0xff] }
 0x16c   : > { %v1040_v23 = vpop.f32.mrb[66].mxu1 }
 0x16d   : > { %v1974_v17 = vpop.f32.mrb[67].mxu1 }
 0x170   : > { %v1212_v27 = vpop.f32.mrb[68].mxu0 }
 0x171   : > { %v2456_v31 = vadd.f32 %v1212_v27, %v1051_v26  ;;  %v1995_v22 = vpop.f32.mrb[69].mxu0 }
 0x172   : > { %v1215_v28 = vpop.f32.mrb[70].mxu0  ;;  %v1361_v24 = vpop.f32.mrb[68].mxu1 }
 0x173   : > { %v1996_v34 = vpop.f32.mrb[71].mxu0  ;;  %v1399_v36 = vadd.f32 %v1361_v24, %v1218_v35  ;;  %v2001_v38 = vpop.f32.mrb[69].mxu1 }
 0x174   : > { %v1364_v32 = vpop.f32.mrb[70].mxu1 }
 0x175   : > { %v1400_v25 = vadd.f32 %v1364_v32, %v1219_v1  ;;  %v2002_v39 = vpop.f32.mrb[71].mxu1 }
 0x178   : > { %v1475_v41 = vpop.f32.mrb[72].mxu0 }
 0x179   : > { %v1513_v30 = vadd.f32 %v1475_v41, %v1399_v36  ;;  %v2023_v42 = vpop.f32.mrb[73].mxu0 }
 0x17a   : > { %v1478_v33 = vpop.f32.mrb[74].mxu0  ;;  %v1369_v43 = vpop.f32.mrb[72].mxu1 }
 0x17b   : > { %v1529_v60 = vadd.f32 %v2461_v37, %v1513_v30  ;;  %v1514_v44 = vadd.f32 %v1478_v33, %v1400_v25  ;;  %v2024_v29 = vpop.f32.mrb[75].mxu0  ;;  %v1401_v35 = vadd.f32 %v1369_v43, %v1220_v8  ;;  %v2005_v45 = vpop.f32.mrb[73].mxu1 }
 0x17c   : > { %v1372_v46 = vpop.f32.mrb[74].mxu1 }
 0x17d   : > { %v1530_v1 = vadd.f32 %v2461_v37, %v1514_v44  ;;  %v1402_v48 = vadd.f32 %v1372_v46, %v1221_v57  ;;  %v2006_v7 = vpop.f32.mrb[75].mxu1  ;;  %v1538_v49 = vmax.f32 %v1529_v60, 0.0 }
 0x17f   : > { %v1539_v50 = vmax.f32 %v1530_v1, 0.0 }
 0x180   : > { %v1483_v52 = vpop.f32.mrb[76].mxu0 }
 0x181   : > { %v1769_v53 = vpack.c.bf16 %v1539_v50, %v1538_v49  ;;  %v1515_v55 = vadd.f32 %v1483_v52, %v1401_v35  ;;  %v2027_v47 = vpop.f32.mrb[77].mxu0 }
 0x182   : > { %v1486_v8 = vpop.f32.mrb[78].mxu0  ;;  %v1377_v56 = vpop.f32.mrb[76].mxu1 }
 0x183   : > { %1770 = vst [vmem:[%s2469_s16] sm:$0xff] %v1769_v53   ;;  %v1531_v40 = vadd.f32 %v2461_v37, %v1515_v55  ;;  %v1516_v57 = vadd.f32 %v1486_v8, %v1402_v48  ;;  %v2028_v58 = vpop.f32.mrb[79].mxu0  ;;  %v1403_v51 = vadd.f32 %v1377_v56, %v1222_v2  ;;  %v2009_v59 = vpop.f32.mrb[77].mxu1 }
 0x184   : > { %v1380_v54 = vpop.f32.mrb[78].mxu1 }
 0x185   : > { %v1532_v63 = vadd.f32 %v2461_v37, %v1516_v57  ;;  %v1404_v0 = vadd.f32 %v1380_v54, %v1223_v5  ;;  %v2010_v18 = vpop.f32.mrb[79].mxu1  ;;  %v1540_v12 = vmax.f32 %v1531_v40, 0.0 }
 0x187   : > { %v1541_v4 = vmax.f32 %v1532_v63, 0.0 }
 0x188   : > { %v1491_v61 = vpop.f32.mrb[80].mxu0 }
 0x189   : > { %v1774_v9 = vpack.c.bf16 %v1541_v4, %v1540_v12  ;;  %v1517_v62 = vadd.f32 %v1491_v61, %v1403_v51  ;;  %v2031_v11 = vpop.f32.mrb[81].mxu0 }
 0x18a   : > { %v1494_v3 = vpop.f32.mrb[82].mxu0  ;;  %v1385_v14 = vpop.f32.mrb[80].mxu1 }
 0x18b   : > { %1786 = vst [vmem:[%s2469_s16 + $0x8] sm:$0xff] %v1774_v9   ;;  %v1533_v15 = vadd.f32 %v2461_v37, %v1517_v62  ;;  %v1518_v6 = vadd.f32 %v1494_v3, %v1404_v0  ;;  %v2032_v2 = vpop.f32.mrb[83].mxu0  ;;  %v1405_v19 = vadd.f32 %v1385_v14, %v2452_v16  ;;  %v2013_v20 = vpop.f32.mrb[81].mxu1 }
 0x18c   : > { %v1388_v21 = vpop.f32.mrb[82].mxu1 }
 0x18d   : > { %v1534_v5 = vadd.f32 %v2461_v37, %v1518_v6  ;;  %v1406_v26 = vadd.f32 %v1388_v21, %v2454_v10  ;;  %v2014_v13 = vpop.f32.mrb[83].mxu1  ;;  %v1542_v23 = vmax.f32 %v1533_v15, 0.0 }
 0x18f   : > { %v1543_v17 = vmax.f32 %v1534_v5, 0.0 }
 0x190   : > { %v1499_v27 = vpop.f32.mrb[84].mxu0 }
 0x191   : > { %v1779_v22 = vpack.c.bf16 %v1543_v17, %v1542_v23  ;;  %v1519_v28 = vadd.f32 %v1499_v27, %v1405_v19  ;;  %v2035_v24 = vpop.f32.mrb[85].mxu0 }
 0x192   : > { %v1502_v34 = vpop.f32.mrb[86].mxu0  ;;  %v1393_v36 = vpop.f32.mrb[84].mxu1 }
 0x193   : > { %1787 = vst [vmem:[%s2469_s16 + $0x10] sm:$0xff] %v1779_v22   ;;  %v1535_v38 = vadd.f32 %v2461_v37, %v1519_v28  ;;  %v1520_v16 = vadd.f32 %v1502_v34, %v1406_v26  ;;  %v2036_v32 = vpop.f32.mrb[87].mxu0  ;;  %v1407_v25 = vadd.f32 %v1393_v36, %v2456_v31  ;;  %v2017_v39 = vpop.f32.mrb[85].mxu1 }
 0x194   : > { %v1396_v41 = vpop.f32.mrb[86].mxu1 }
 0x195   : > { %v1536_v10 = vadd.f32 %v2461_v37, %v1520_v16  ;;  %v2018_v30 = vpop.f32.mrb[87].mxu1  ;;  %v1544_v42 = vmax.f32 %v1535_v38, 0.0 }
 0x197   : > { %v1545_v33 = vmax.f32 %v1536_v10, 0.0 }
 0x198   : > { %v1507_v43 = vpop.f32.mrb[88].mxu0 }
 0x199   : > { %v1784_v60 = vpack.c.bf16 %v1545_v33, %v1544_v42  ;;  %v1521_v44 = vadd.f32 %v1507_v43, %v1407_v25  ;;  %v2039_v29 = vpop.f32.mrb[89].mxu0 }
 0x19a   : > { %v1510_v35 = vpop.f32.mrb[90].mxu0 }
 0x19b   : > { %1788 = vst [vmem:[%s2469_s16 + $0x18] sm:$0xff] %v1784_v60   ;;  %v1537_v45 = vadd.f32 %v2461_v37, %v1521_v44  ;;  %v2040_v46 = vpop.f32.mrb[91].mxu0 }
 0x19d   : > { %v1546_v1 = vmax.f32 %v1537_v45, 0.0 }
 0x19f   : > { %v1765_v48 = vpack.c.bf16 %v1546_v1, %v1546_v1 }
 0x1a1   : > { %1592 = vst [vmem:[%s2469_s16 + $0x20] sm:$0xf] %v1765_v48 }
 0x1a2 PF: > { %s13_s12 = sadd.s32 1, %s2098_s12  }
 0x1a3   : > { %p10_p4 = scmp.ge.s32.totalorder %s13_s12, 4  }
 0x1a5   :  { %12 = sbr.rel (!%p10_p4) target bundleno = 1 (0x1), region = 70 }

// kernel: basic_block_forward.5
= control target key start
LH: loop header
LB: loop body
LE: loop exit
PB: predicated region body
PF: predicated region fallthrough
CT: control target
= control target key end

     0   :  { %s2915_s15 = smov 0   ;;  %s3541_s0 = inlined_call_operand.vmem [shape: bf16[2,110,128], index: 0, kind: input, shape index: {}]   ;;  %s3542_s1 = inlined_call_operand.vmem [shape: bf16[9,128,128], index: 1, kind: input, shape index: {}]   ;;  %s3543_s2 = inlined_call_operand.vmem [shape: f32[1,128], index: 2, kind: input, shape index: {}]   ;;  %s3544_s3 = inlined_call_operand.vmem [shape: bf16[2,80,128], index: 3, kind: input, shape index: {}]   ;;  %s3545_s4 = inlined_call_operand.vmem [shape: f32[2,80,128], index: 4, kind: output, shape index: {}]  }
   0x1 LB: > { %s2057_s16 = sadd.s32 4294967295, %s2886_s15   ;;  %p2061_p0 = scmp.ge.s32.totalorder %s2886_s15, 1  ;;  %s2886_s15 = sphi %s2915_s15, %s14_s15  }
   0x2   : > { %p172_p1 = scmp.lt.s32.totalorder %s2886_s15, 3 }
   0x4   : > { %p173_p2 = pnand %p2061_p0, %p172_p1 }
   0x5   : > { %v2785_v0 = vld [vmem:[%s3542_s1 + $0x40] sm:$0xff] (!%p173_p2)   ;;  %v2888_v1 = vmov (!%p173_p2), 0.0   ;;  %v2787_v3 = vld [vmem:[%s3542_s1 + $0x48] sm:$0xff] (!%p173_p2)   ;;  %vm2889_vm0 = vmmov (!%p173_p2), 0   ;;  %p203_p3 = scmp.lt.s32.totalorder (!%p173_p2), %s2057_s16, 1  ;;  %v2789_v5 = vld [vmem:[%s3542_s1 + $0x50] sm:$0xff] (!%p173_p2)  }
   0x6   : > { %176 = sbr.rel (%p173_p2) target bundleno = 437 (0x1b5), region = 36  ;;  %2432 = vmatprep.subr.bf16.mxu0 (!%p173_p2), %v2888_v1  ;;  %2468 = vmatprep.subr.bf16.mxu1 (!%p173_p2), %v2888_v1  ;;  %v2786_v2 = vld [vmem:[%s3542_s1] sm:$0xff] (!%p173_p2)   ;;  %v2788_v4 = vld [vmem:[%s3542_s1 + $0x8] sm:$0xff] (!%p173_p2)   ;;  %v2790_v6 = vld [vmem:[%s3542_s1 + $0x10] sm:$0xff] (!%p173_p2)   ;;  %vm291_vm1 = vsmask.f32 (!%p173_p2), 7424 }
   0x7   : > { %2433 = vmatpush3.bf16.msra.mxu0 (!%p173_p2), %v2785_v0  ;;  %2448 = vmatprep.mubr.msk.bf16.mxu0 (!%p173_p2), %vm2889_vm0, %v2888_v1  ;;  %v2791_v7 = vld [vmem:[%s3542_s1 + $0x58] sm:$0xff] (!%p173_p2)   ;;  %v2793_v9 = vld [vmem:[%s3542_s1 + $0x60] sm:$0xff] (!%p173_p2)   ;;  %v2795_v13 = vld [vmem:[%s3542_s1 + $0x68] sm:$0xff] (!%p173_p2)   ;;  %vm609_vm2 = vcmask (!%p173_p2), 1046528   ;;  %vm981_vm3 = vsmask.f32 (!%p173_p2), 6400 }
   0x8   : > { %2469 = vmatpush3.bf16.msra.mxu1 (!%p173_p2), %v2786_v2  ;;  %2434 = vmatprep.subr.bf16.mxu0 (!%p173_p2), %v2888_v1  ;;  %v2792_v8 = vld [vmem:[%s3542_s1 + $0x18] sm:$0xff] (!%p173_p2)   ;;  %v2794_v10 = vld [vmem:[%s3542_s1 + $0x20] sm:$0xff] (!%p173_p2)   ;;  %v2796_v16 = vld [vmem:[%s3542_s1 + $0x28] sm:$0xff] (!%p173_p2)   ;;  %vm1192_vm4 = vcmask (!%p173_p2), 1045504   ;;  %vm1564_vm5 = vsmask.f32 (!%p173_p2), 5376 }
   0x9   : > { %2470 = vmatprep.subr.bf16.mxu1 (!%p173_p2), %v2888_v1  ;;  %2484 = vmatprep.mubr.msk.bf16.mxu1 (!%p173_p2), %vm2889_vm0, %v2888_v1  ;;  %v2797_v18 = vld [vmem:[%s3542_s1 + $0x70] sm:$0xff] (!%p173_p2)   ;;  %v2799_v23 = vld [vmem:[%s3542_s1 + $0x78] sm:$0xff] (!%p173_p2)   ;;  %v2803_v28 = vld [vmem:[%s3542_s1 + $0x80] sm:$0xff] (!%p173_p2)   ;;  %vm1775_vm6 = vcmask (!%p173_p2), 1044480  }
   0xa   : > { %v2798_v22 = vld [vmem:[%s3542_s1 + $0x30] sm:$0xff] (!%p173_p2)   ;;  %v2800_v24 = vld [vmem:[%s3542_s1 + $0x38] sm:$0xff] (!%p173_p2)   ;;  %v2806_v32 = vld [vmem:[%s3542_s1 + $0xc0] sm:$0xff] (!%p173_p2)  }
   0xb   : > { %2435 = vmatpush3.bf16.msra.mxu0 (!%p173_p2), %v2787_v3  ;;  %v2804_v34 = vld [vmem:[%s3542_s1 + $0x88] sm:$0xff] (!%p173_p2)   ;;  %v2807_v40 = vld [vmem:[%s3542_s1 + $0x90] sm:$0xff] (!%p173_p2)   ;;  %v2810_v44 = vld [vmem:[%s3542_s1 + $0x98] sm:$0xff] (!%p173_p2)  }
   0xc   : > { %2471 = vmatpush3.bf16.msra.mxu1 (!%p173_p2), %v2788_v4  ;;  %2436 = vmatprep.subr.bf16.mxu0 (!%p173_p2), %v2888_v1  ;;  %v2808_v37 = vld [vmem:[%s3542_s1 + $0xc8] sm:$0xff] (!%p173_p2)   ;;  %v2811_v42 = vld [vmem:[%s3542_s1 + $0xd0] sm:$0xff] (!%p173_p2)   ;;  %v2813_v47 = vld [vmem:[%s3542_s1 + $0xd8] sm:$0xff] (!%p173_p2)  }
   0xd   : > { %s3547_s16 = smov (!%p203_p3, %s2057_s16), 1  ;;  %2472 = vmatprep.subr.bf16.mxu1 %v2888_v1  ;;  %v2812_v48 = vld [vmem:[%s3542_s1 + $0xa0] sm:$0xff]   ;;  %v2816_v56 = vld [vmem:[%s3542_s1 + $0xa8] sm:$0xff]   ;;  %v2818_v61 = vld [vmem:[%s3542_s1 + $0xb0] sm:$0xff]  }
   0xe   : > { %s2772_s29 = smul.u32 56, %s3547_s16  ;;  %v2815_v52 = vld [vmem:[%s3542_s1 + $0xe0] sm:$0xff]   ;;  %v2817_v57 = vld [vmem:[%s3542_s1 + $0xe8] sm:$0xff]   ;;  %v2820_v62 = vld [vmem:[%s3542_s1 + $0xf0] sm:$0xff]  }
   0xf   : > { %2437 = vmatpush3.bf16.msra.mxu0 %v2789_v5  ;;  %v2821_v63 = vld [vmem:[%s3542_s1 + $0xb8] sm:$0xff]   ;;  %s2774_s5 = smul.u32 80, %s3547_s16 }
  0x10   : > { %2473 = vmatpush3.bf16.msra.mxu1 %v2790_v6  ;;  %2438 = vmatprep.subr.bf16.mxu0 %v2888_v1  ;;  %s2965_s10 = scalar_lea.vmem %s3541_s0, %s2772_s29  ;;  %v2822_v3 = vld [vmem:[%s3542_s1 + $0xf8] sm:$0xff]  }
  0x11   : > { %2474 = vmatprep.subr.bf16.mxu1 %v2888_v1  ;;  %v219_v11 = vld [vmem:[%s2965_s10] sm:$0xf]  ;;  %v2977_v12 = vld [vmem:[%s2965_s10 + $0x4] sm:$0xf]  ;;  %v2984_v15 = vld [vmem:[%s2965_s10 + $0x8] sm:$0xff]   ;;  %s3512_s7 = scalar_lea.vmem %s3545_s4, %s2774_s5 }
  0x12   : > { %v2081_v14 = vcombine.low %v219_v11, %v2977_v12  ;;  %v300_v21 = vshll.u32 %v2984_v15, 16  ;;  %v3007_v27 = vld [vmem:[%s2965_s10 + $0x10] sm:$0xff]   ;;  %v304_v30 = vshrl.u32 %v2984_v15, 16  ;;  %v3023_v33 = vld [vmem:[%s2965_s10 + $0x18] sm:$0xff]   ;;  %v3052_v45 = vld [vmem:[%s2965_s10 + $0x20] sm:$0xff]  }
  0x13   : > { %2439 = vmatpush3.bf16.msra.mxu0 %v2791_v7  ;;  %v308_v31 = vshll.u32 %v3007_v27, 16  ;;  %v316_v38 = vshll.u32 %v3023_v33, 16  ;;  %v312_v41 = vshrl.u32 %v3007_v27, 16  ;;  %v320_v50 = vshrl.u32 %v3023_v33, 16  ;;  %v588_v4 = vld [vmem:[%s2965_s10] sm:$0xe] }
  0x14   : > { %2475 = vmatpush3.bf16.msra.mxu1 %v2792_v8  ;;  %2440 = vmatprep.subr.bf16.mxu0 %v2888_v1  ;;  %v295_v17 = vshll.u32 %v2081_v14, 16  ;;  %v293_v19 = vshrl.u32 %v2081_v14, 16  ;;  %v302_v26 = vrot.slane %v300_v21, 1  ;;  %v324_v51 = vshll.u32 %v3052_v45, 16  ;;  %v757_v5 = vld [vmem:[%s2965_s10 + $0x4] sm:$0xe] }
  0x15   : > { %2476 = vmatprep.subr.bf16.mxu1 %v2888_v1  ;;  %v310_v36 = vrot.slane %v308_v31, 1  ;;  %v318_v43 = vrot.slane %v316_v38, 1  ;;  %v3075_v53 = vld [vmem:[%s2965_s10 + $0x28] ss:$0 sps:$4 sm:$0x11]   ;;  %v328_v59 = vshrl.u32 %v3052_v45, 16  ;;  %v2119_v8 = vcombine.low %v588_v4, %v2977_v12 }
  0x16   : > { %v297_v20 = vrot.slane %v295_v17, 1  ;;  %v306_v35 = vor.u32 %v304_v30, %v302_v26  ;;  %v326_v55 = vrot.slane %v324_v51, 1  ;;  %v332_v60 = vshll.u32 %v3075_v53, 16  ;;  %v3117_v6 = vld [vmem:[%s2965_s10 + $0x8] sm:$0xf]  ;;  %v2826_v17 = vld [vmem:[%s3542_s1 + $0x100] sm:$0xff]  }
  0x17   : > { %2441 = vmatpush3.bf16.msra.mxu0 %v2793_v9  ;;  %v314_v46 = vor.u32 %v312_v41, %v310_v36  ;;  %v322_v54 = vor.u32 %v320_v50, %v318_v43  ;;  %v3123_v9 = vcombine.low %v757_v5, %v3117_v6  ;;  %v610_v11 = vrot.slane %v2119_v8, 1  ;;  %v2833_v30 = vld [vmem:[%s3542_s1 + $0x118] sm:$0xff]   ;;  %v2840_v41 = vld [vmem:[%s3542_s1 + $0x168] sm:$0xff]  }
  0x18   : > { %2477 = vmatpush3.bf16.msra.mxu1 %v2794_v10  ;;  %2442 = vmatprep.subr.bf16.mxu0 %v2888_v1  ;;  %v298_v25 = vor.u32 %v297_v20, %v293_v19  ;;  %v311_v39 = vsel %vm291_vm1, %v306_v35, %v310_v36  ;;  %v330_v0 = vor.u32 %v328_v59, %v326_v55  ;;  %v334_v2 = vrot.slane %v332_v60, 1  ;;  %v3126_v10 = vld [vmem:[%s2965_s10 + $0xc] sm:$0xff]   ;;  %v3144_v19 = vld [vmem:[%s2965_s10 + $0x14] sm:$0xff]   ;;  %v3197_v36 = vld [vmem:[%s2965_s10 + $0x24] sm:$0xff]  }
  0x19   : > { %2478 = vmatprep.subr.bf16.mxu1 %v2888_v1  ;;  %v319_v49 = vsel %vm291_vm1, %v314_v46, %v318_v43  ;;  %v327_v58 = vsel %vm291_vm1, %v322_v54, %v326_v55  ;;  %v611_v12 = vrot.slane %v2984_v15, 1  ;;  %v2827_v20 = vld [vmem:[%s3542_s1 + $0x108] sm:$0xff]   ;;  %v613_v21 = vrot.slane %v3007_v27, 1  ;;  %v2843_v46 = vld [vmem:[%s3542_s1 + $0x170] sm:$0xff]   ;;  %v2845_v54 = vld [vmem:[%s3542_s1 + $0x178] sm:$0xff]  }
  0x1a   : > { %v303_v29 = vsel %vm291_vm1, %v298_v25, %v302_v26  ;;  %v335_v7 = vsel %vm291_vm1, %v330_v0, %v334_v2  ;;  %v2830_v25 = vld [vmem:[%s3542_s1 + $0x110] sm:$0xff]   ;;  %v617_v38 = vrot.slane %v3052_v45, 1  ;;  %v2842_v43 = vld [vmem:[%s2965_s10 + $0x2c] ss:$0 sps:$4 sm:$0x11]   ;;  %v991_v50 = vshrl.u32 %v3126_v10, 16 }
  0x1b   : > { %2443 = vmatpush3.bf16.msra.mxu0 %v2795_v13  ;;  %v813_v13 = vrot.slane %v3123_v9, 1  ;;  %v994_v51 = vshll.u32 %v3126_v10, 16  ;;  %v1171_v55 = vld [vmem:[%s2965_s10 + $0x4] sm:$0xc]  ;;  %v1000_v2 = vshrl.u32 %v3144_v19, 16  ;;  %v1194_v5 = vrot.slane %v3126_v10, 2 }
  0x1c   : > { %2479 = vmatpush3.bf16.msra.mxu1 %v2796_v16  ;;  %2444 = vmatprep.subr.bf16.mxu0 %v2888_v1  ;;  %v612_v16 = vsel %vm609_vm2, %v610_v11, %v611_v12  ;;  %v993_v59 = vrot.slane %v991_v50, 1 }
  0x1d   : > { %2480 = vmatprep.subr.bf16.mxu1 %v2888_v1  ;;  %v996_v60 = vrot.slane %v994_v51, 2  ;;  %v1002_v8 = vrot.slane %v1000_v2, 1  ;;  %v3342_v51 = vld [vmem:[%s2965_s10 + $0x10] sm:$0xff]  }
  0x1f   : > { %2445 = vmatpush3.bf16.msra.mxu0 %v2797_v18  ;;  %v997_v0 = vor.u32 %v996_v60, %v993_v59  ;;  %v1577_v59 = vshll.u32 %v3342_v51, 16  ;;  %v2863_v60 = vld [vmem:[%s3542_s1 + $0x1f8] sm:$0xff]  }
  0x20   : > { %2481 = vmatpush3.bf16.msra.mxu1 %v2798_v22  ;;  %2446 = vmatprep.subr.bf16.mxu0 %v2888_v1  ;;  %v816_v22 = vrot.slane %v3144_v19, 1 }
  0x21   : > { %2482 = vmatprep.subr.bf16.mxu1 %v2888_v1 }
  0x23   : > { %2447 = vmatpush3.bf16.msra.mxu0 %v2799_v23  ;;  %v2831_v23 = vld [vmem:[%s3542_s1 + $0x148] sm:$0xff]  }
  0x24   : > { %2483 = vmatpush3.bf16.msra.mxu1 %v2800_v24  ;;  %2504 = vmatprep.subr.bf16.mxu0 %v2888_v1  ;;  %v614_v24 = vsel %vm609_vm2, %v611_v12, %v613_v21  ;;  %v2849_v12 = vld [vmem:[%s3542_s1 + $0x1c0] sm:$0xff]  }
  0x25   : > { %2540 = vmatprep.subr.bf16.mxu1 %v2888_v1 }
  0x26   : > { %2449 = vmatmul.mubr.bf16.vlgmr.msra.gmra.mrb[0].mxu0 %v303_v29  ;;  %v615_v29 = vrot.slane %v3023_v33, 1 }
  0x27   : > { %2485 = vmatmul.mubr.bf16.vlgmr.msra.gmra.mrb[0].mxu1 %v2081_v14  ;;  %2505 = vmatpush3.bf16.msra.mxu0 %v2803_v28  ;;  %v814_v14 = vrot.slane %v3126_v10, 1  ;;  %v2834_v28 = vld [vmem:[%s3542_s1 + $0x150] sm:$0xff]   ;;  %v2848_v10 = vld [vmem:[%s3542_s1 + $0x188] sm:$0xff]  }
  0x28   : > { %2506 = vmatprep.subr.bf16.mxu0 %v2888_v1  ;;  %2452 = vmatprep.mubr.msk.bf16.mxu0 %vm2889_vm0, %v2888_v1 }
  0x29   : > { %2488 = vmatprep.mubr.msk.bf16.mxu1 %vm2889_vm0, %v2888_v1  ;;  %2541 = vmatpush3.bf16.msra.mxu1 %v2806_v32  ;;  %v815_v18 = vsel %vm609_vm2, %v813_v13, %v814_v14  ;;  %v817_v26 = vsel %vm609_vm2, %v814_v14, %v816_v22  ;;  %v2836_v32 = vld [vmem:[%s3542_s1 + $0x158] sm:$0xff]  }
  0x2a   : > { %2542 = vmatprep.subr.bf16.mxu1 %v2888_v1 }
  0x2b   : > { %2507 = vmatpush3.bf16.msra.mxu0 %v2804_v34  ;;  %v2835_v34 = vld [vmem:[%s3542_s1 + $0x120] sm:$0xff]  }
  0x2c   : > { %2508 = vmatprep.subr.bf16.mxu0 %v2888_v1 }
  0x2d   : > { %2543 = vmatpush3.bf16.msra.mxu1 %v2808_v37  ;;  %v2838_v37 = vld [vmem:[%s3542_s1 + $0x160] sm:$0xff]  }
  0x2e   : > { %2453 = vmatmul.mubr.bf16.gmra.mrb[4].mxu0 %v311_v39  ;;  %2544 = vmatprep.subr.bf16.mxu1 %v2888_v1  ;;  %v2839_v39 = vld [vmem:[%s3542_s1 + $0x128] sm:$0xff]  }
  0x2f   : > { %2489 = vmatmul.mubr.bf16.gmra.mrb[4].mxu1 %v2984_v15  ;;  %2509 = vmatpush3.bf16.msra.mxu0 %v2807_v40  ;;  %v2829_v15 = vld [vmem:[%s3542_s1 + $0x140] sm:$0xff]   ;;  %v820_v40 = vrot.slane %v3197_v36, 1 }
  0x30   : > { %2456 = vmatprep.mubr.msk.bf16.mxu0 %vm2889_vm0, %v2888_v1  ;;  %2492 = vmatprep.mubr.msk.bf16.mxu1 %vm2889_vm0, %v2888_v1 }
  0x31   : > { %2510 = vmatprep.subr.bf16.mxu0 %v2888_v1  ;;  %2545 = vmatpush3.bf16.msra.mxu1 %v2811_v42  ;;  %v618_v42 = vsel %vm609_vm2, %v615_v29, %v617_v38 }
  0x32   : > { %2546 = vmatprep.subr.bf16.mxu1 %v2888_v1 }
  0x33   : > { %2511 = vmatpush3.bf16.msra.mxu0 %v2810_v44 }
  0x34   : > { %2512 = vmatprep.subr.bf16.mxu0 %v2888_v1 }
  0x35   : > { %2547 = vmatpush3.bf16.msra.mxu1 %v2813_v47  ;;  %v619_v47 = vrot.slane %v3075_v53, 1  ;;  %v2844_v53 = vld [vmem:[%s3542_s1 + $0x138] sm:$0xff]  }
  0x36   : > { %2457 = vmatmul.mubr.bf16.gmra.mrb[8].mxu0 %v319_v49  ;;  %2548 = vmatprep.subr.bf16.mxu1 %v2888_v1  ;;  %v986_v49 = vshll.u32 %v3123_v9, 16 }
  0x37   : > { %2493 = vmatmul.mubr.bf16.gmra.mrb[8].mxu1 %v3007_v27  ;;  %2513 = vmatpush3.bf16.msra.mxu0 %v2812_v48  ;;  %v3170_v27 = vld [vmem:[%s2965_s10 + $0x1c] sm:$0xff]   ;;  %v983_v48 = vshrl.u32 %v3123_v9, 16 }
  0x38   : > { %2460 = vmatprep.mubr.msk.bf16.mxu0 %vm2889_vm0, %v2888_v1  ;;  %2496 = vmatprep.mubr.msk.bf16.mxu1 %vm2889_vm0, %v2888_v1  ;;  %v818_v31 = vrot.slane %v3170_v27, 1  ;;  %v1009_v14 = vshrl.u32 %v3170_v27, 16 }
  0x39   : > { %2514 = vmatprep.subr.bf16.mxu0 %v2888_v1  ;;  %2549 = vmatpush3.bf16.msra.mxu1 %v2815_v52  ;;  %v822_v52 = vrot.slane %v2842_v43, 1  ;;  %v2858_v43 = vld [vmem:[%s3542_s1 + $0x1e8] sm:$0xff]  }
  0x3a   : > { %2550 = vmatprep.subr.bf16.mxu1 %v2888_v1  ;;  %v819_v35 = vsel %vm609_vm2, %v816_v22, %v818_v31  ;;  %v821_v44 = vsel %vm609_vm2, %v818_v31, %v820_v40 }
  0x3b   : > { %2515 = vmatpush3.bf16.msra.mxu0 %v2816_v56  ;;  %v620_v56 = vsel %vm609_vm2, %v617_v38, %v619_v47 }
  0x3c   : > { %2516 = vmatprep.subr.bf16.mxu0 %v2888_v1 }
  0x3d   : > { %2551 = vmatpush3.bf16.msra.mxu1 %v2817_v57  ;;  %v985_v57 = vrot.slane %v983_v48, 1 }
  0x3e   : > { %2461 = vmatmul.mubr.bf16.gmra.mrb[12].mxu0 %v327_v58  ;;  %2552 = vmatprep.subr.bf16.mxu1 %v2888_v1  ;;  %v988_v58 = vrot.slane %v986_v49, 2 }
  0x3f   : > { %2497 = vmatmul.mubr.bf16.gmra.mrb[12].mxu1 %v3023_v33  ;;  %2464 = vmatprep.mubr.msk.bf16.mxu0 %vm2889_vm0, %v2888_v1  ;;  %v616_v33 = vsel %vm609_vm2, %v613_v21, %v615_v29  ;;  %v1011_v21 = vrot.slane %v1009_v14, 1  ;;  %v1198_v29 = vrot.slane %v3170_v27, 2 }
  0x40   : > { %2500 = vmatprep.mubr.msk.bf16.mxu1 %vm2889_vm0, %v2888_v1  ;;  %2517 = vmatpush3.bf16.msra.mxu0 %v2818_v61  ;;  %v823_v61 = vsel %vm609_vm2, %v820_v40, %v822_v52  ;;  %v2861_v52 = vld [vmem:[%s3542_s1 + $0x1f0] sm:$0xff]  }
  0x41   : > { %2553 = vmatpush3.bf16.msra.mxu1 %v2820_v62  ;;  %2518 = vmatprep.subr.bf16.mxu0 %v2888_v1  ;;  %v2199_v62 = vcombine.low %v1171_v55, %v3117_v6  ;;  %v2862_v55 = vld [vmem:[%s3542_s1 + $0x1b8] sm:$0xff]  }
  0x42   : > { %2554 = vmatprep.subr.bf16.mxu1 %v2888_v1 }
  0x43   : > { %v1193_v4 = vrot.slane %v2199_v62, 2 }
  0x44   : > { %2519 = vmatpush3.bf16.msra.mxu0 %v2821_v63  ;;  %v989_v63 = vor.u32 %v988_v58, %v985_v57  ;;  %v1574_v58 = vshrl.u32 %v3342_v51, 16 }
  0x45   : > { %2555 = vmatpush3.bf16.msra.mxu1 %v2822_v3  ;;  %2576 = vmatprep.subr.bf16.mxu0 %v2888_v1  ;;  %v1003_v3 = vshll.u32 %v3144_v19, 16  ;;  %v1195_v11 = vsel %vm1192_vm4, %v1193_v4, %v1194_v5  ;;  %v3365_v4 = vld [vmem:[%s2965_s10 + $0x18] sm:$0xff]  }
  0x46   : > { %2465 = vmatmul.mubr.bf16.gmra.mrb[16].mxu0 %v335_v7  ;;  %2612 = vmatprep.subr.bf16.mxu1 %v2888_v1  ;;  %v998_v6 = vsel %vm981_vm3, %v989_v63, %v997_v0  ;;  %v2847_v7 = vld [vmem:[%s3542_s1 + $0x180] sm:$0xff]   ;;  %v1576_v2 = vrot.slane %v1574_v58, 2 }
  0x47   : > { %2501 = vmatmul.mubr.bf16.gmra.mrb[16].mxu1 %v3052_v45  ;;  %2520 = vmatprep.mubr.msk.bf16.mxu0 %vm2889_vm0, %v2888_v1  ;;  %v2841_v45 = vld [vmem:[%s3542_s1 + $0x130] sm:$0xff]   ;;  %v1005_v9 = vrot.slane %v1003_v3, 2  ;;  %v1579_v3 = vrot.slane %v1577_v59, 3 }
  0x48   : > { %2556 = vmatprep.mubr.msk.bf16.mxu1 %vm2889_vm0, %v2888_v1 }
  0x49   : > { %v1006_v13 = vor.u32 %v1005_v9, %v1002_v8  ;;  %v1580_v8 = vor.u32 %v1579_v3, %v1576_v2  ;;  %v1583_v9 = vshrl.u32 %v3365_v4, 16 }
  0x4b   : > { %v1585_v14 = vrot.slane %v1583_v9, 2 }
  0x4e   : > { %2521 = vmatmul.mubr.bf16.vlgmr.msra.gmra.mrb[20].mxu0 %v612_v16  ;;  %v1012_v16 = vshll.u32 %v3170_v27, 16 }
  0x4f   : > { %2557 = vmatmul.mubr.bf16.vlgmr.msra.gmra.mrb[20].mxu1 %v815_v18  ;;  %2577 = vmatpush3.bf16.msra.mxu0 %v2826_v17  ;;  %v1196_v17 = vrot.slane %v3144_v19, 2  ;;  %v2851_v18 = vld [vmem:[%s3542_s1 + $0x1c8] sm:$0xff]  }
  0x50   : > { %2578 = vmatprep.subr.bf16.mxu0 %v2888_v1  ;;  %2524 = vmatprep.mubr.msk.bf16.mxu0 %vm2889_vm0, %v2888_v1  ;;  %v1014_v22 = vrot.slane %v1012_v16, 2 }
  0x51   : > { %2560 = vmatprep.mubr.msk.bf16.mxu1 %vm2889_vm0, %v2888_v1  ;;  %2613 = vmatpush3.bf16.msra.mxu1 %v2829_v15  ;;  %v1007_v15 = vsel %vm981_vm3, %v997_v0, %v1006_v13  ;;  %v1197_v19 = vsel %vm1192_vm4, %v1194_v5, %v1196_v17  ;;  %v1199_v27 = vsel %vm1192_vm4, %v1196_v17, %v1198_v29  ;;  %v3382_v17 = vld [vmem:[%s2965_s10 + $0x20] sm:$0xff]  }
  0x52   : > { %2614 = vmatprep.subr.bf16.mxu1 %v2888_v1 }
  0x53   : > { %2579 = vmatpush3.bf16.msra.mxu0 %v2827_v20  ;;  %v2850_v20 = vld [vmem:[%s3542_s1 + $0x190] sm:$0xff]  }
  0x54   : > { %2580 = vmatprep.subr.bf16.mxu0 %v2888_v1 }
  0x55   : > { %2615 = vmatpush3.bf16.msra.mxu1 %v2831_v23  ;;  %v2853_v23 = vld [vmem:[%s3542_s1 + $0x1d0] sm:$0xff]  }
  0x56   : > { %2525 = vmatmul.mubr.bf16.gmra.mrb[24].mxu0 %v614_v24  ;;  %2616 = vmatprep.subr.bf16.mxu1 %v2888_v1  ;;  %v1015_v24 = vor.u32 %v1014_v22, %v1011_v21  ;;  %v1592_v21 = vshrl.u32 %v3382_v17, 16  ;;  %v1595_v22 = vshll.u32 %v3382_v17, 16 }
  0x57   : > { %2561 = vmatmul.mubr.bf16.gmra.mrb[24].mxu1 %v817_v26  ;;  %2581 = vmatpush3.bf16.msra.mxu0 %v2830_v25  ;;  %v2852_v25 = vld [vmem:[%s3542_s1 + $0x198] sm:$0xff]   ;;  %v1018_v26 = vshrl.u32 %v3197_v36, 16 }
  0x58   : > { %2528 = vmatprep.mubr.msk.bf16.mxu0 %vm2889_vm0, %v2888_v1  ;;  %2564 = vmatprep.mubr.msk.bf16.mxu1 %vm2889_vm0, %v2888_v1  ;;  %v1016_v31 = vsel %vm981_vm3, %v1006_v13, %v1015_v24 }
  0x59   : > { %2582 = vmatprep.subr.bf16.mxu0 %v2888_v1  ;;  %2617 = vmatpush3.bf16.msra.mxu1 %v2834_v28  ;;  %v1021_v28 = vshll.u32 %v3197_v36, 16 }
  0x5a   : > { %2618 = vmatprep.subr.bf16.mxu1 %v2888_v1 }
  0x5b   : > { %2583 = vmatpush3.bf16.msra.mxu0 %v2833_v30  ;;  %v2855_v30 = vld [vmem:[%s3542_s1 + $0x1d8] sm:$0xff]  }
  0x5c   : > { %2584 = vmatprep.subr.bf16.mxu0 %v2888_v1 }
  0x5d   : > { %2619 = vmatpush3.bf16.msra.mxu1 %v2836_v32  ;;  %v2854_v32 = vld [vmem:[%s3542_s1 + $0x1a0] sm:$0xff]  }
  0x5e   : > { %2529 = vmatmul.mubr.bf16.gmra.mrb[28].mxu0 %v616_v33  ;;  %2620 = vmatprep.subr.bf16.mxu1 %v2888_v1  ;;  %v1020_v33 = vrot.slane %v1018_v26, 1  ;;  %v1597_v26 = vrot.slane %v1595_v22, 3 }
  0x5f   : > { %2565 = vmatmul.mubr.bf16.gmra.mrb[28].mxu1 %v819_v35  ;;  %2585 = vmatpush3.bf16.msra.mxu0 %v2835_v34  ;;  %v1023_v34 = vrot.slane %v1021_v28, 2  ;;  %v2860_v35 = vld [vmem:[%s2965_s10 + $0x2c] ss:$0 sps:$4 sm:$0x33]  }
  0x60   : > { %2532 = vmatprep.mubr.msk.bf16.mxu0 %vm2889_vm0, %v2888_v1  ;;  %2568 = vmatprep.mubr.msk.bf16.mxu1 %vm2889_vm0, %v2888_v1  ;;  %v1027_v40 = vshrl.u32 %v2860_v35, 16  ;;  %v3403_v28 = vld [vmem:[%s2965_s10 + $0x28] sm:$0xff]  }
  0x61   : > { %2586 = vmatprep.subr.bf16.mxu0 %v2888_v1  ;;  %2621 = vmatpush3.bf16.msra.mxu1 %v2838_v37  ;;  %v2856_v37 = vld [vmem:[%s3542_s1 + $0x1e0] sm:$0xff]   ;;  %v1024_v38 = vor.u32 %v1023_v34, %v1020_v33  ;;  %v1604_v33 = vshll.u32 %v3403_v28, 16 }
  0x62   : > { %2622 = vmatprep.subr.bf16.mxu1 %v2888_v1  ;;  %v1029_v47 = vrot.slane %v1027_v40, 1  ;;  %v1403_v40 = vrot.slane %v3403_v28, 2 }
  0x63   : > { %2587 = vmatpush3.bf16.msra.mxu0 %v2839_v39  ;;  %v2857_v39 = vld [vmem:[%s3542_s1 + $0x1a8] sm:$0xff]  }
  0x64   : > { %2588 = vmatprep.subr.bf16.mxu0 %v2888_v1 }
  0x65   : > { %2623 = vmatpush3.bf16.msra.mxu1 %v2840_v41  ;;  %v1030_v41 = vshll.u32 %v2860_v35, 16 }
  0x66   : > { %2533 = vmatmul.mubr.bf16.gmra.mrb[32].mxu0 %v618_v42  ;;  %2624 = vmatprep.subr.bf16.mxu1 %v2888_v1  ;;  %v1200_v42 = vrot.slane %v3197_v36, 2  ;;  %v2859_v36 = vld [vmem:[%s3542_s1 + $0x1b0] sm:$0xff]  }
  0x67   : > { %2569 = vmatmul.mubr.bf16.gmra.mrb[32].mxu1 %v821_v44  ;;  %2536 = vmatprep.mubr.msk.bf16.mxu0 %vm2889_vm0, %v2888_v1  ;;  %v1340_v44 = vld [vmem:[%s2965_s10 + $0x8] sm:$0xc]  ;;  %v1032_v48 = vrot.slane %v1030_v41, 2 }
  0x68   : > { %2572 = vmatprep.mubr.msk.bf16.mxu1 %vm2889_vm0, %v2888_v1  ;;  %2589 = vmatpush3.bf16.msra.mxu0 %v2841_v45  ;;  %v3331_v45 = vld [vmem:[%s2965_s10 + $0xc] sm:$0xf]  ;;  %v1201_v49 = vsel %vm1192_vm4, %v1198_v29, %v1200_v42  ;;  %v1401_v29 = vrot.slane %v3382_v17, 2 }
  0x69   : > { %2625 = vmatpush3.bf16.msra.mxu1 %v2843_v46  ;;  %2590 = vmatprep.subr.bf16.mxu0 %v2888_v1  ;;  %v1025_v46 = vsel %vm981_vm3, %v1015_v24, %v1024_v38  ;;  %v2224_v50 = vcombine.low %v1340_v44, %v3331_v45  ;;  %v2874_v41 = vld [vmem:[%s3542_s1 + $0x228] sm:$0xff]  }
  0x6a   : > { %2626 = vmatprep.subr.bf16.mxu1 %v2888_v1 }
  0x6b   : > { %v1569_v57 = vshll.u32 %v2224_v50, 16  ;;  %v1396_v5 = vrot.slane %v2224_v50, 2 }
  0x6c   : > { %2591 = vmatpush3.bf16.msra.mxu0 %v2844_v53  ;;  %v1033_v53 = vor.u32 %v1032_v48, %v1029_v47  ;;  %v2876_v47 = vld [vmem:[%s2965_s10 + $0x30] ss:$0 sps:$4 sm:$0x33]  }
  0x6d   : > { %2627 = vmatpush3.bf16.msra.mxu1 %v2845_v54  ;;  %2648 = vmatprep.subr.bf16.mxu0 %v2888_v1  ;;  %v1202_v54 = vrot.slane %v2860_v35, 2  ;;  %v1571_v0 = vrot.slane %v1569_v57, 3  ;;  %v2872_v35 = vld [vmem:[%s3542_s1 + $0x220] sm:$0xff]  }
  0x6e   : > { %2537 = vmatmul.mubr.bf16.gmra.mrb[36].mxu0 %v620_v56  ;;  %2684 = vmatprep.subr.bf16.mxu1 %v2888_v1  ;;  %v1566_v56 = vshrl.u32 %v2224_v50, 16 }
  0x6f   : > { %2573 = vmatmul.mubr.bf16.gmra.mrb[36].mxu1 %v823_v61  ;;  %2592 = vmatprep.mubr.msk.bf16.mxu0 %vm2889_vm0, %v2888_v1  ;;  %v1034_v61 = vsel %vm981_vm3, %v1024_v38, %v1033_v53  ;;  %v1203_v62 = vsel %vm1192_vm4, %v1200_v42, %v1202_v54  ;;  %v1606_v38 = vrot.slane %v1604_v33, 3  ;;  %v2878_v54 = vld [vmem:[%s3542_s1 + $0x238] sm:$0xff]  }
  0x70   : > { %2628 = vmatprep.mubr.msk.bf16.mxu1 %vm2889_vm0, %v2888_v1  ;;  %v1568_v63 = vrot.slane %v1566_v56, 2 }
  0x76   : > { %2593 = vmatmul.mubr.bf16.vlgmr.msra.gmra.mrb[40].mxu0 %v998_v6  ;;  %v1397_v6 = vrot.slane %v3342_v51, 2 }
  0x77   : > { %2629 = vmatmul.mubr.bf16.vlgmr.msra.gmra.mrb[40].mxu1 %v1195_v11  ;;  %2649 = vmatpush3.bf16.msra.mxu0 %v2847_v7  ;;  %v1572_v7 = vor.u32 %v1571_v0, %v1568_v63  ;;  %v1586_v11 = vshll.u32 %v3365_v4, 16  ;;  %v1779_v0 = vrot.slane %v3365_v4, 3 }
  0x78   : > { %2650 = vmatprep.subr.bf16.mxu0 %v2888_v1  ;;  %2596 = vmatprep.mubr.msk.bf16.mxu0 %vm2889_vm0, %v2888_v1 }
  0x79   : > { %2632 = vmatprep.mubr.msk.bf16.mxu1 %vm2889_vm0, %v2888_v1  ;;  %2685 = vmatpush3.bf16.msra.mxu1 %v2849_v12  ;;  %v1398_v12 = vsel %vm1192_vm4, %v1396_v5, %v1397_v6  ;;  %v1581_v13 = vsel %vm1564_vm5, %v1572_v7, %v1580_v8  ;;  %v1588_v16 = vrot.slane %v1586_v11, 3 }
  0x7a   : > { %2686 = vmatprep.subr.bf16.mxu1 %v2888_v1 }
  0x7b   : > { %2651 = vmatpush3.bf16.msra.mxu0 %v2848_v10  ;;  %v2866_v10 = vld [vmem:[%s3542_s1 + $0x200] sm:$0xff]  }
  0x7c   : > { %2652 = vmatprep.subr.bf16.mxu0 %v2888_v1 }
  0x7d   : > { %2687 = vmatpush3.bf16.msra.mxu1 %v2851_v18  ;;  %v2867_v18 = vld [vmem:[%s3542_s1 + $0x208] sm:$0xff]  }
  0x7e   : > { %2597 = vmatmul.mubr.bf16.gmra.mrb[44].mxu0 %v1007_v15  ;;  %2688 = vmatprep.subr.bf16.mxu1 %v2888_v1  ;;  %v1399_v15 = vrot.slane %v3365_v4, 2 }
  0x7f   : > { %2633 = vmatmul.mubr.bf16.gmra.mrb[44].mxu1 %v1197_v19  ;;  %2653 = vmatpush3.bf16.msra.mxu0 %v2850_v20  ;;  %v1589_v20 = vor.u32 %v1588_v16, %v1585_v14 }
  0x80   : > { %2600 = vmatprep.mubr.msk.bf16.mxu0 %vm2889_vm0, %v2888_v1  ;;  %2636 = vmatprep.mubr.msk.bf16.mxu1 %vm2889_vm0, %v2888_v1  ;;  %v1400_v19 = vsel %vm1192_vm4, %v1397_v6, %v1399_v15  ;;  %v1402_v34 = vsel %vm1192_vm4, %v1399_v15, %v1401_v29 }
  0x81   : > { %2654 = vmatprep.subr.bf16.mxu0 %v2888_v1  ;;  %2689 = vmatpush3.bf16.msra.mxu1 %v2853_v23  ;;  %v2869_v23 = vld [vmem:[%s3542_s1 + $0x210] sm:$0xff]   ;;  %v1590_v24 = vsel %vm1564_vm5, %v1580_v8, %v1589_v20 }
  0x82   : > { %2690 = vmatprep.subr.bf16.mxu1 %v2888_v1 }
  0x83   : > { %2655 = vmatpush3.bf16.msra.mxu0 %v2852_v25  ;;  %v1594_v25 = vrot.slane %v1592_v21, 2 }
  0x84   : > { %2656 = vmatprep.subr.bf16.mxu0 %v2888_v1 }
  0x85   : > { %2691 = vmatpush3.bf16.msra.mxu1 %v2855_v30  ;;  %v2871_v30 = vld [vmem:[%s3542_s1 + $0x218] sm:$0xff]  }
  0x86   : > { %2601 = vmatmul.mubr.bf16.gmra.mrb[48].mxu0 %v1016_v31  ;;  %2692 = vmatprep.subr.bf16.mxu1 %v2888_v1  ;;  %v1598_v31 = vor.u32 %v1597_v26, %v1594_v25 }
  0x87   : > { %2637 = vmatmul.mubr.bf16.gmra.mrb[48].mxu1 %v1199_v27  ;;  %2657 = vmatpush3.bf16.msra.mxu0 %v2854_v32  ;;  %v1601_v32 = vshrl.u32 %v3403_v28, 16 }
  0x88   : > { %2604 = vmatprep.mubr.msk.bf16.mxu0 %vm2889_vm0, %v2888_v1  ;;  %2640 = vmatprep.mubr.msk.bf16.mxu1 %vm2889_vm0, %v2888_v1  ;;  %v1599_v27 = vsel %vm1564_vm5, %v1589_v20, %v1598_v31 }
  0x89   : > { %2658 = vmatprep.subr.bf16.mxu0 %v2888_v1  ;;  %2693 = vmatpush3.bf16.msra.mxu1 %v2856_v37  ;;  %v1603_v37 = vrot.slane %v1601_v32, 2 }
  0x8a   : > { %2694 = vmatprep.subr.bf16.mxu1 %v2888_v1 }
  0x8b   : > { %2659 = vmatpush3.bf16.msra.mxu0 %v2857_v39  ;;  %v3425_v39 = vld [vmem:[%s2965_s10 + $0x30] ss:$0 sps:$4 sm:$0x77]   ;;  %v1607_v42 = vor.u32 %v1606_v38, %v1603_v37 }
  0x8c   : > { %2660 = vmatprep.subr.bf16.mxu0 %v2888_v1  ;;  %v1613_v44 = vshll.u32 %v3425_v39, 16 }
  0x8d   : > { %2695 = vmatpush3.bf16.msra.mxu1 %v2858_v43  ;;  %v1610_v43 = vshrl.u32 %v3425_v39, 16  ;;  %v1608_v48 = vsel %vm1564_vm5, %v1598_v31, %v1607_v42 }
  0x8e   : > { %2605 = vmatmul.mubr.bf16.gmra.mrb[52].mxu0 %v1025_v46  ;;  %2696 = vmatprep.subr.bf16.mxu1 %v2888_v1  ;;  %v1404_v46 = vsel %vm1192_vm4, %v1401_v29, %v1403_v40  ;;  %v1615_v50 = vrot.slane %v1613_v44, 3 }
  0x8f   : > { %2641 = vmatmul.mubr.bf16.gmra.mrb[52].mxu1 %v1201_v49  ;;  %2608 = vmatprep.mubr.msk.bf16.mxu0 %vm2889_vm0, %v2888_v1  ;;  %v2875_v49 = vld [vmem:[%s3542_s1 + $0x230] sm:$0xff]  }
  0x90   : > { %2644 = vmatprep.mubr.msk.bf16.mxu1 %vm2889_vm0, %v2888_v1  ;;  %2661 = vmatpush3.bf16.msra.mxu0 %v2859_v36  ;;  %v1612_v36 = vrot.slane %v1610_v43, 2 }
  0x91   : > { %2697 = vmatpush3.bf16.msra.mxu1 %v2861_v52  ;;  %2662 = vmatprep.subr.bf16.mxu0 %v2888_v1  ;;  %v1405_v52 = vrot.slane %v2876_v47, 2 }
  0x92   : > { %2698 = vmatprep.subr.bf16.mxu1 %v2888_v1  ;;  %v1616_v53 = vor.u32 %v1615_v50, %v1612_v36 }
  0x93   : > { %v1406_v56 = vsel %vm1192_vm4, %v1403_v40, %v1405_v52 }
  0x94   : > { %2663 = vmatpush3.bf16.msra.mxu0 %v2862_v55  ;;  %v1754_v55 = vld [vmem:[%s2965_s10 + $0x8] sm:$0x8]  ;;  %v1617_v58 = vsel %vm1564_vm5, %v1607_v42, %v1616_v53  ;;  %s2773_s10 = smul.u32 40, %s3547_s16 }
  0x95   : > { %2699 = vmatpush3.bf16.msra.mxu1 %v2863_v60  ;;  %2720 = vmatprep.subr.bf16.mxu0 %v2888_v1  ;;  %v2279_v57 = vcombine.low %v1754_v55, %v3331_v45  ;;  %v1777_v60 = vrot.slane %v3342_v51, 3  ;;  %v1783_v45 = vrot.slane %v3403_v28, 3  ;;  %v1785_v51 = vrot.slane %v3425_v39, 3 }
  0x96   : > { %2609 = vmatmul.mubr.bf16.gmra.mrb[56].mxu0 %v1034_v61  ;;  %2756 = vmatprep.subr.bf16.mxu1 %v2888_v1  ;;  %v1781_v61 = vrot.slane %v3382_v17, 3  ;;  %s3495_s28 = scalar_lea.vmem %s3544_s3, %s2773_s10 }
  0x97   : > { %2645 = vmatmul.mubr.bf16.gmra.mrb[56].mxu1 %v1203_v62  ;;  %2664 = vmatprep.mubr.msk.bf16.mxu0 %vm2889_vm0, %v2888_v1  ;;  %v1776_v59 = vrot.slane %v2279_v57, 3  ;;  %v1780_v2 = vsel %vm1775_vm6, %v1777_v60, %v1779_v0  ;;  %v1786_v3 = vsel %vm1775_vm6, %v1783_v45, %v1785_v51 }
  0x98   : > { %2700 = vmatprep.mubr.msk.bf16.mxu1 %vm2889_vm0, %v2888_v1  ;;  %v1784_v63 = vsel %vm1775_vm6, %v1781_v61, %v1783_v45  ;;  %v1782_v5 = vsel %vm1775_vm6, %v1779_v0, %v1781_v61 }
  0x99   : > { %v1778_v62 = vsel %vm1775_vm6, %v1776_v59, %v1777_v60 }
  0x9e   : > { %2665 = vmatmul.mubr.bf16.vlgmr.msra.gmra.mrb[60].mxu0 %v1398_v12 }
  0x9f   : > { %2701 = vmatmul.mubr.bf16.vlgmr.msra.gmra.mrb[60].mxu1 %v1581_v13  ;;  %2721 = vmatpush3.bf16.msra.mxu0 %v2866_v10 }
  0xa0   : > { %2722 = vmatprep.subr.bf16.mxu0 %v2888_v1  ;;  %2668 = vmatprep.mubr.msk.bf16.mxu0 %vm2889_vm0, %v2888_v1 }
  0xa1   : > { %2704 = vmatprep.mubr.msk.bf16.mxu1 %vm2889_vm0, %v2888_v1  ;;  %2764 = vmatpush3.bf16.msra.mxu1 %v2866_v10 }
  0xa2   : > { %2757 = vmatprep.subr.bf16.mxu1 %v2888_v1 }
  0xa3   : > { %2723 = vmatpush3.bf16.msra.mxu0 %v2867_v18 }
  0xa4   : > { %2724 = vmatprep.subr.bf16.mxu0 %v2888_v1 }
  0xa5   : > { %2765 = vmatpush3.bf16.msra.mxu1 %v2867_v18 }
  0xa6   : > { %2669 = vmatmul.mubr.bf16.gmra.mrb[64].mxu0 %v1400_v19  ;;  %2758 = vmatprep.subr.bf16.mxu1 %v2888_v1 }
  0xa7   : > { %2705 = vmatmul.mubr.bf16.gmra.mrb[64].mxu1 %v1590_v24  ;;  %2725 = vmatpush3.bf16.msra.mxu0 %v2869_v23 }
  0xa8   : > { %2672 = vmatprep.mubr.msk.bf16.mxu0 %vm2889_vm0, %v2888_v1  ;;  %2708 = vmatprep.mubr.msk.bf16.mxu1 %vm2889_vm0, %v2888_v1 }
  0xa9   : > { %2726 = vmatprep.subr.bf16.mxu0 %v2888_v1  ;;  %2766 = vmatpush3.bf16.msra.mxu1 %v2869_v23 }
  0xaa   : > { %2759 = vmatprep.subr.bf16.mxu1 %v2888_v1 }
  0xab   : > { %2727 = vmatpush3.bf16.msra.mxu0 %v2871_v30 }
  0xac   : > { %2728 = vmatprep.subr.bf16.mxu0 %v2888_v1 }
  0xad   : > { %2767 = vmatpush3.bf16.msra.mxu1 %v2871_v30 }
  0xae   : > { %2673 = vmatmul.mubr.bf16.gmra.mrb[68].mxu0 %v1402_v34  ;;  %2760 = vmatprep.subr.bf16.mxu1 %v2888_v1 }
  0xaf   : > { %2709 = vmatmul.mubr.bf16.gmra.mrb[68].mxu1 %v1599_v27  ;;  %2729 = vmatpush3.bf16.msra.mxu0 %v2872_v35 }
  0xb0   : > { %2676 = vmatprep.mubr.msk.bf16.mxu0 %vm2889_vm0, %v2888_v1  ;;  %2712 = vmatprep.mubr.msk.bf16.mxu1 %vm2889_vm0, %v2888_v1 }
  0xb1   : > { %2768 = vmatpush3.bf16.msra.mxu1 %v2872_v35  ;;  %2730 = vmatprep.subr.bf16.mxu0 %v2888_v1 }
  0xb2   : > { %2761 = vmatprep.subr.bf16.mxu1 %v2888_v1 }
  0xb3   : > { %2731 = vmatpush3.bf16.msra.mxu0 %v2874_v41 }
  0xb4   : > { %2732 = vmatprep.subr.bf16.mxu0 %v2888_v1 }
  0xb5   : > { %2769 = vmatpush3.bf16.msra.mxu1 %v2874_v41 }
  0xb6   : > { %2677 = vmatmul.mubr.bf16.gmra.mrb[72].mxu0 %v1404_v46  ;;  %2762 = vmatprep.subr.bf16.mxu1 %v2888_v1 }
  0xb7   : > { %2713 = vmatmul.mubr.bf16.gmra.mrb[72].mxu1 %v1608_v48  ;;  %2680 = vmatprep.mubr.msk.bf16.mxu0 %vm2889_vm0, %v2888_v1 }
  0xb8   : > { %2716 = vmatprep.mubr.msk.bf16.mxu1 %vm2889_vm0, %v2888_v1  ;;  %2733 = vmatpush3.bf16.msra.mxu0 %v2875_v49 }
  0xb9   : > { %2770 = vmatpush3.bf16.msra.mxu1 %v2875_v49  ;;  %2734 = vmatprep.subr.bf16.mxu0 %v2888_v1 }
  0xba   : > { %2763 = vmatprep.subr.bf16.mxu1 %v2888_v1 }
  0xbc   : > { %2735 = vmatpush3.bf16.msra.mxu0 %v2878_v54 }
  0xbd   : > { %2771 = vmatpush3.bf16.msra.mxu1 %v2878_v54 }
  0xbe   : > { %2681 = vmatmul.mubr.bf16.gmra.mrb[76].mxu0 %v1406_v56 }
  0xbf   : > { %2717 = vmatmul.mubr.bf16.gmra.mrb[76].mxu1 %v1617_v58  ;;  %2736 = vmatprep.mubr.msk.bf16.mxu0 %vm2889_vm0, %v2888_v1 }
  0xc0   : > { %2748 = vmatprep.mubr.msk.bf16.mxu1 %vm2889_vm0, %v2888_v1 }
  0xc6   : > { %2737 = vmatmul.mubr.bf16.vlgmr.msra.gmra.mrb[80].mxu0 %v1778_v62 }
  0xc7   : > { %2749 = vmatmul.mubr.bf16.vlgmr.msra.gmra.mrb[80].mxu1 %v1784_v63  ;;  %2740 = vmatprep.mubr.msk.bf16.mxu0 %vm2889_vm0, %v2888_v1 }
  0xc8   : > { %2752 = vmatprep.mubr.msk.bf16.mxu1 %vm2889_vm0, %v2888_v1 }
  0xce   : > { %2741 = vmatmul.mubr.bf16.gmra.mrb[84].mxu0 %v1780_v2 }
  0xcf   : > { %2753 = vmatmul.mubr.bf16.gmra.mrb[84].mxu1 %v1786_v3  ;;  %2744 = vmatprep.mubr.msk.bf16.mxu0 %vm2889_vm0, %v2888_v1 }
  0xd6   : > { %2745 = vmatmul.mubr.bf16.gmra.mrb[88].mxu0 %v1782_v5 }
  0xf9   : > { %v423_v6 = vpop.f32.mrb[0].mxu0 }
  0xfa   : > { %v549_v7 = vpop.f32.mrb[0].mxu1  ;;  %v2450_v4 = vpop.f32.mrb[1].mxu0 }
  0xfb   : > { %v550_v8 = vadd.f32 %v549_v7, %v423_v6  ;;  %v2486_v9 = vpop.f32.mrb[1].mxu1  ;;  %v426_v11 = vpop.f32.mrb[2].mxu0 }
  0xfc   : > { %v552_v12 = vpop.f32.mrb[2].mxu1  ;;  %v2451_v10 = vpop.f32.mrb[3].mxu0 }
  0xfd   : > { %v553_v13 = vadd.f32 %v552_v12, %v426_v11  ;;  %v2487_v14 = vpop.f32.mrb[3].mxu1 }
 0x101   : > { %v431_v16 = vpop.f32.mrb[4].mxu0 }
 0x102   : > { %v557_v17 = vpop.f32.mrb[4].mxu1  ;;  %v2454_v18 = vpop.f32.mrb[5].mxu0 }
 0x103   : > { %v558_v15 = vadd.f32 %v557_v17, %v431_v16  ;;  %v2490_v20 = vpop.f32.mrb[5].mxu1  ;;  %v434_v21 = vpop.f32.mrb[6].mxu0 }
 0x104   : > { %v560_v1 = vpop.f32.mrb[6].mxu1  ;;  %v2455_v22 = vpop.f32.mrb[7].mxu0 }
 0x105   : > { %v561_v19 = vadd.f32 %v560_v1, %v434_v21  ;;  %v2491_v23 = vpop.f32.mrb[7].mxu1 }
 0x109   : > { %v439_v24 = vpop.f32.mrb[8].mxu0 }
 0x10a   : > { %v565_v25 = vpop.f32.mrb[8].mxu1  ;;  %v2458_v26 = vpop.f32.mrb[9].mxu0 }
 0x10b   : > { %v566_v28 = vadd.f32 %v565_v25, %v439_v24  ;;  %v2494_v29 = vpop.f32.mrb[9].mxu1  ;;  %v442_v30 = vpop.f32.mrb[10].mxu0 }
 0x10c   : > { %v568_v31 = vpop.f32.mrb[10].mxu1  ;;  %v2459_v32 = vpop.f32.mrb[11].mxu0 }
 0x10d   : > { %v569_v33 = vadd.f32 %v568_v31, %v442_v30  ;;  %v2495_v34 = vpop.f32.mrb[11].mxu1 }
 0x111   : > { %v447_v35 = vpop.f32.mrb[12].mxu0 }
 0x112   : > { %v573_v27 = vpop.f32.mrb[12].mxu1  ;;  %v2462_v37 = vpop.f32.mrb[13].mxu0 }
 0x113   : > { %v574_v38 = vadd.f32 %v573_v27, %v447_v35  ;;  %v2498_v39 = vpop.f32.mrb[13].mxu1  ;;  %v450_v40 = vpop.f32.mrb[14].mxu0 }
 0x114   : > { %v576_v41 = vpop.f32.mrb[14].mxu1  ;;  %v2463_v42 = vpop.f32.mrb[15].mxu0 }
 0x115   : > { %v577_v43 = vadd.f32 %v576_v41, %v450_v40  ;;  %v2499_v44 = vpop.f32.mrb[15].mxu1 }
 0x119   : > { %v455_v46 = vpop.f32.mrb[16].mxu0 }
 0x11a   : > { %v581_v47 = vpop.f32.mrb[16].mxu1  ;;  %v2466_v48 = vpop.f32.mrb[17].mxu0 }
 0x11b   : > { %v582_v49 = vadd.f32 %v581_v47, %v455_v46  ;;  %v2502_v36 = vpop.f32.mrb[17].mxu1  ;;  %v458_v50 = vpop.f32.mrb[18].mxu0 }
 0x11c   : > { %v584_v52 = vpop.f32.mrb[18].mxu1  ;;  %v2467_v53 = vpop.f32.mrb[19].mxu0 }
 0x11d   : > { %v585_v54 = vadd.f32 %v584_v52, %v458_v50  ;;  %v2503_v55 = vpop.f32.mrb[19].mxu1 }
 0x121   : > { %v708_v56 = vpop.f32.mrb[20].mxu0 }
 0x122   : > { %v747_v57 = vadd.f32 %v708_v56, %v550_v8  ;;  %v2522_v58 = vpop.f32.mrb[21].mxu0  ;;  %v911_v59 = vpop.f32.mrb[20].mxu1 }
 0x123   : > { %v711_v60 = vpop.f32.mrb[22].mxu0  ;;  %v2558_v61 = vpop.f32.mrb[21].mxu1 }
 0x124   : > { %v748_v45 = vadd.f32 %v711_v60, %v553_v13  ;;  %v950_v62 = vadd.f32 %v911_v59, %v747_v57  ;;  %v2523_v63 = vpop.f32.mrb[23].mxu0  ;;  %v914_v0 = vpop.f32.mrb[22].mxu1 }
 0x125   : > { %v2559_v51 = vpop.f32.mrb[23].mxu1 }
 0x126   : > { %v951_v2 = vadd.f32 %v914_v0, %v748_v45 }
 0x129   : > { %v716_v3 = vpop.f32.mrb[24].mxu0 }
 0x12a   : > { %v749_v5 = vadd.f32 %v716_v3, %v558_v15  ;;  %v2526_v6 = vpop.f32.mrb[25].mxu0  ;;  %v919_v7 = vpop.f32.mrb[24].mxu1 }
 0x12b   : > { %v719_v4 = vpop.f32.mrb[26].mxu0  ;;  %v2562_v9 = vpop.f32.mrb[25].mxu1 }
 0x12c   : > { %v750_v11 = vadd.f32 %v719_v4, %v561_v19  ;;  %v952_v12 = vadd.f32 %v919_v7, %v749_v5  ;;  %v2527_v10 = vpop.f32.mrb[27].mxu0  ;;  %v922_v8 = vpop.f32.mrb[26].mxu1 }
 0x12d   : > { %v2563_v14 = vpop.f32.mrb[27].mxu1 }
 0x12e   : > { %v953_v16 = vadd.f32 %v922_v8, %v750_v11 }
 0x131   : > { %v724_v17 = vpop.f32.mrb[28].mxu0 }
 0x132   : > { %v751_v18 = vadd.f32 %v724_v17, %v566_v28  ;;  %v2530_v13 = vpop.f32.mrb[29].mxu0  ;;  %v927_v20 = vpop.f32.mrb[28].mxu1 }
 0x133   : > { %v727_v21 = vpop.f32.mrb[30].mxu0  ;;  %v2566_v1 = vpop.f32.mrb[29].mxu1 }
 0x134   : > { %v752_v22 = vadd.f32 %v727_v21, %v569_v33  ;;  %v954_v23 = vadd.f32 %v927_v20, %v751_v18  ;;  %v2531_v24 = vpop.f32.mrb[31].mxu0  ;;  %v930_v15 = vpop.f32.mrb[30].mxu1 }
 0x135   : > { %v2567_v25 = vpop.f32.mrb[31].mxu1 }
 0x136   : > { %v955_v26 = vadd.f32 %v930_v15, %v752_v22 }
 0x139   : > { %v732_v29 = vpop.f32.mrb[32].mxu0 }
 0x13a   : > { %v753_v30 = vadd.f32 %v732_v29, %v574_v38  ;;  %v2534_v19 = vpop.f32.mrb[33].mxu0  ;;  %v935_v31 = vpop.f32.mrb[32].mxu1 }
 0x13b   : > { %v735_v32 = vpop.f32.mrb[34].mxu0  ;;  %v2570_v34 = vpop.f32.mrb[33].mxu1 }
 0x13c   : > { %v754_v35 = vadd.f32 %v735_v32, %v577_v43  ;;  %v956_v27 = vadd.f32 %v935_v31, %v753_v30  ;;  %v2535_v37 = vpop.f32.mrb[35].mxu0  ;;  %v938_v28 = vpop.f32.mrb[34].mxu1 }
 0x13d   : > { %v2571_v39 = vpop.f32.mrb[35].mxu1 }
 0x13e   : > { %v957_v40 = vadd.f32 %v938_v28, %v754_v35 }
 0x141   : > { %v740_v41 = vpop.f32.mrb[36].mxu0 }
 0x142   : > { %v755_v42 = vadd.f32 %v740_v41, %v582_v49  ;;  %v2538_v33 = vpop.f32.mrb[37].mxu0  ;;  %v943_v44 = vpop.f32.mrb[36].mxu1 }
 0x143   : > { %v743_v46 = vpop.f32.mrb[38].mxu0  ;;  %v2574_v47 = vpop.f32.mrb[37].mxu1 }
 0x144   : > { %v756_v48 = vadd.f32 %v743_v46, %v585_v54  ;;  %v958_v36 = vadd.f32 %v943_v44, %v755_v42  ;;  %v2539_v50 = vpop.f32.mrb[39].mxu0  ;;  %v946_v38 = vpop.f32.mrb[38].mxu1 }
 0x145   : > { %v2575_v52 = vpop.f32.mrb[39].mxu1 }
 0x146   : > { %v959_v53 = vadd.f32 %v946_v38, %v756_v48 }
 0x149   : > { %v1122_v55 = vpop.f32.mrb[40].mxu0 }
 0x14a   : > { %v1161_v56 = vadd.f32 %v1122_v55, %v950_v62  ;;  %v2594_v43 = vpop.f32.mrb[41].mxu0  ;;  %v1291_v57 = vpop.f32.mrb[40].mxu1 }
 0x14b   : > { %v1125_v58 = vpop.f32.mrb[42].mxu0  ;;  %v2630_v59 = vpop.f32.mrb[41].mxu1 }
 0x14c   : > { %v1162_v60 = vadd.f32 %v1125_v58, %v951_v2  ;;  %v1330_v61 = vadd.f32 %v1291_v57, %v1161_v56  ;;  %v2595_v45 = vpop.f32.mrb[43].mxu0  ;;  %v1294_v49 = vpop.f32.mrb[42].mxu1 }
 0x14d   : > { %v2631_v63 = vpop.f32.mrb[43].mxu1 }
 0x14e   : > { %v1331_v0 = vadd.f32 %v1294_v49, %v1162_v60 }
 0x151   : > { %v1130_v51 = vpop.f32.mrb[44].mxu0 }
 0x152   : > { %v1163_v3 = vadd.f32 %v1130_v51, %v952_v12  ;;  %v2598_v54 = vpop.f32.mrb[45].mxu0  ;;  %v1299_v5 = vpop.f32.mrb[44].mxu1 }
 0x153   : > { %v1133_v6 = vpop.f32.mrb[46].mxu0  ;;  %v2634_v7 = vpop.f32.mrb[45].mxu1 }
 0x154   : > { %v1164_v4 = vadd.f32 %v1133_v6, %v953_v16  ;;  %v1332_v9 = vadd.f32 %v1299_v5, %v1163_v3  ;;  %v2599_v11 = vpop.f32.mrb[47].mxu0  ;;  %v1302_v62 = vpop.f32.mrb[46].mxu1 }
 0x155   : > { %v2635_v10 = vpop.f32.mrb[47].mxu1 }
 0x156   : > { %v1333_v8 = vadd.f32 %v1302_v62, %v1164_v4 }
 0x159   : > { %v1138_v14 = vpop.f32.mrb[48].mxu0 }
 0x15a   : > { %v1165_v17 = vadd.f32 %v1138_v14, %v954_v23  ;;  %v2602_v2 = vpop.f32.mrb[49].mxu0  ;;  %v1307_v18 = vpop.f32.mrb[48].mxu1 }
 0x15b   : > { %v1141_v13 = vpop.f32.mrb[50].mxu0  ;;  %v2638_v20 = vpop.f32.mrb[49].mxu1 }
 0x15c   : > { %v1166_v21 = vadd.f32 %v1141_v13, %v955_v26  ;;  %v1334_v1 = vadd.f32 %v1307_v18, %v1165_v17  ;;  %v2603_v22 = vpop.f32.mrb[51].mxu0  ;;  %v1310_v12 = vpop.f32.mrb[50].mxu1 }
 0x15d   : > { %v2639_v24 = vpop.f32.mrb[51].mxu1 }
 0x15e   : > { %v1335_v15 = vadd.f32 %v1310_v12, %v1166_v21 }
 0x161   : > { %v1146_v25 = vpop.f32.mrb[52].mxu0 }
 0x162   : > { %v1167_v29 = vadd.f32 %v1146_v25, %v956_v27  ;;  %v2606_v16 = vpop.f32.mrb[53].mxu0  ;;  %v1315_v30 = vpop.f32.mrb[52].mxu1 }
 0x163   : > { %v1149_v19 = vpop.f32.mrb[54].mxu0  ;;  %v2642_v31 = vpop.f32.mrb[53].mxu1 }
 0x164   : > { %v1168_v32 = vadd.f32 %v1149_v19, %v957_v40  ;;  %v1336_v34 = vadd.f32 %v1315_v30, %v1167_v29  ;;  %v2607_v35 = vpop.f32.mrb[55].mxu0  ;;  %v1318_v23 = vpop.f32.mrb[54].mxu1 }
 0x165   : > { %v2643_v37 = vpop.f32.mrb[55].mxu1 }
 0x166   : > { %v1337_v28 = vadd.f32 %v1318_v23, %v1168_v32 }
 0x169   : > { %v1154_v39 = vpop.f32.mrb[56].mxu0 }
 0x16a   : > { %v1169_v41 = vadd.f32 %v1154_v39, %v958_v36  ;;  %v2610_v26 = vpop.f32.mrb[57].mxu0  ;;  %v1323_v42 = vpop.f32.mrb[56].mxu1 }
 0x16b   : > { %v1157_v33 = vpop.f32.mrb[58].mxu0  ;;  %v2646_v44 = vpop.f32.mrb[57].mxu1 }
 0x16c   : > { %v1170_v46 = vadd.f32 %v1157_v33, %v959_v53  ;;  %v1338_v47 = vadd.f32 %v1323_v42, %v1169_v41  ;;  %v2611_v48 = vpop.f32.mrb[59].mxu0  ;;  %v1326_v27 = vpop.f32.mrb[58].mxu1 }
 0x16d   : > { %v2647_v50 = vpop.f32.mrb[59].mxu1 }
 0x16e   : > { %v1339_v38 = vadd.f32 %v1326_v27, %v1170_v46  ;;  %v2292_v27 = vld [vmem:[%s3495_s28] sm:$0xff]  }
 0x171   : > { %v1494_v52 = vpop.f32.mrb[60].mxu0 }
 0x172   : > { %v1533_v55 = vadd.f32 %v1494_v52, %v1330_v61  ;;  %v2666_v40 = vpop.f32.mrb[61].mxu0  ;;  %v1705_v56 = vpop.f32.mrb[60].mxu1  ;;  %v3502_v52 = vld [vmem:[%s3543_s2] ss:$0 sm:$0xff] }
 0x173   : > { %v1497_v43 = vpop.f32.mrb[62].mxu0  ;;  %v2702_v57 = vpop.f32.mrb[61].mxu1 }
 0x174   : > { %v1534_v58 = vadd.f32 %v1497_v43, %v1331_v0  ;;  %v1744_v59 = vadd.f32 %v1705_v56, %v1533_v55  ;;  %v2667_v60 = vpop.f32.mrb[63].mxu0  ;;  %v1708_v36 = vpop.f32.mrb[62].mxu1  ;;  %v2293_v55 = vunpack.c.l.bf16 %v2292_v27 }
 0x175   : > { %v2703_v45 = vpop.f32.mrb[63].mxu1 }
 0x176   : > { %v3481_v49 = vadd.f32 %v1708_v36, %v1534_v58 }
 0x179   : > { %v1502_v63 = vpop.f32.mrb[64].mxu0 }
 0x17a   : > { %v1535_v53 = vadd.f32 %v1502_v63, %v1332_v9  ;;  %v2670_v51 = vpop.f32.mrb[65].mxu0  ;;  %v1713_v3 = vpop.f32.mrb[64].mxu1  ;;  %v2294_v63 = vunpack.c.h.bf16 %v2292_v27 }
 0x17b   : > { %v1505_v54 = vpop.f32.mrb[66].mxu0  ;;  %v2706_v5 = vpop.f32.mrb[65].mxu1 }
 0x17c   : > { %v1536_v6 = vadd.f32 %v1505_v54, %v1333_v8  ;;  %v3483_v7 = vadd.f32 %v1713_v3, %v1535_v53  ;;  %v2671_v61 = vpop.f32.mrb[67].mxu0  ;;  %v1716_v4 = vpop.f32.mrb[66].mxu1 }
 0x17d   : > { %v2707_v11 = vpop.f32.mrb[67].mxu1 }
 0x17e   : > { %v3485_v62 = vadd.f32 %v1716_v4, %v1536_v6  ;;  %v2311_v11 = vld [vmem:[%s3495_s28 + $0x8] sm:$0xff]  }
 0x181   : > { %v1510_v0 = vpop.f32.mrb[68].mxu0 }
 0x182   : > { %v1537_v10 = vadd.f32 %v1510_v0, %v1334_v1  ;;  %v2674_v14 = vpop.f32.mrb[69].mxu0  ;;  %v1721_v17 = vpop.f32.mrb[68].mxu1 }
 0x183   : > { %v1513_v2 = vpop.f32.mrb[70].mxu0  ;;  %v2710_v18 = vpop.f32.mrb[69].mxu1  ;;  %v2314_v14 = vld [vmem:[%s3495_s28 + $0x20] sm:$0xff]  }
 0x184   : > { %v1538_v13 = vadd.f32 %v1513_v2, %v1335_v15  ;;  %v3487_v9 = vadd.f32 %v1721_v17, %v1537_v10  ;;  %v2675_v20 = vpop.f32.mrb[71].mxu0  ;;  %v1724_v21 = vpop.f32.mrb[70].mxu1 }
 0x185   : > { %v2711_v8 = vpop.f32.mrb[71].mxu1 }
 0x186   : > { %v3489_v22 = vadd.f32 %v1724_v21, %v1538_v13  ;;  %v2297_v21 = vunpack.c.l.bf16 %v2311_v11 }
 0x189   : > { %v1518_v12 = vpop.f32.mrb[72].mxu0 }
 0x18a   : > { %v1539_v24 = vadd.f32 %v1518_v12, %v1336_v34  ;;  %v2678_v25 = vpop.f32.mrb[73].mxu0  ;;  %v1729_v29 = vpop.f32.mrb[72].mxu1 }
 0x18b   : > { %v1521_v16 = vpop.f32.mrb[74].mxu0  ;;  %v2714_v30 = vpop.f32.mrb[73].mxu1 }
 0x18c   : > { %v1540_v1 = vadd.f32 %v1521_v16, %v1337_v28  ;;  %v1750_v19 = vadd.f32 %v1729_v29, %v1539_v24  ;;  %v2679_v31 = vpop.f32.mrb[75].mxu0  ;;  %v1732_v32 = vpop.f32.mrb[74].mxu1  ;;  %v2309_v29 = vunpack.c.l.bf16 %v2314_v14 }
 0x18d   : > { %v2715_v35 = vpop.f32.mrb[75].mxu1  ;;  %v2298_v31 = vunpack.c.h.bf16 %v2311_v11 }
 0x18e   : > { %v1751_v15 = vadd.f32 %v1732_v32, %v1540_v1 }
 0x191   : > { %v1526_v23 = vpop.f32.mrb[76].mxu0 }
 0x192   : > { %v1541_v37 = vadd.f32 %v1526_v23, %v1338_v47  ;;  %v2682_v39 = vpop.f32.mrb[77].mxu0  ;;  %v1737_v41 = vpop.f32.mrb[76].mxu1  ;;  %v2313_v47 = vld [vmem:[%s3495_s28 + $0x18] sm:$0xff]   ;;  %v2310_v23 = vunpack.c.h.bf16 %v2314_v14 }
 0x193   : > { %v1529_v26 = vpop.f32.mrb[78].mxu0  ;;  %v2718_v42 = vpop.f32.mrb[77].mxu1  ;;  %v2305_v57 = vunpack.c.l.bf16 %v2313_v47  ;;  %v2306_v54 = vunpack.c.h.bf16 %v2313_v47 }
 0x194   : > { %v1542_v33 = vadd.f32 %v1529_v26, %v1339_v38  ;;  %v1752_v34 = vadd.f32 %v1737_v41, %v1541_v37  ;;  %v2683_v44 = vpop.f32.mrb[79].mxu0  ;;  %v1740_v46 = vpop.f32.mrb[78].mxu1 }
 0x195   : > { %v2719_v28 = vpop.f32.mrb[79].mxu1 }
 0x196   : > { %v1753_v48 = vadd.f32 %v1740_v46, %v1542_v33  ;;  %v2312_v33 = vld [vmem:[%s3495_s28 + $0x10] sm:$0xff]  }
 0x197   : > { %v2301_v47 = vunpack.c.l.bf16 %v2312_v33 }
 0x199   : > { %v1874_v50 = vpop.f32.mrb[80].mxu0 }
 0x19a   : > { %v1913_v38 = vadd.f32 %v1874_v50, %v1744_v59  ;;  %v1898_v40 = vpop.f32.mrb[80].mxu1  ;;  %v2738_v56 = vpop.f32.mrb[81].mxu0 }
 0x19b   : > { %v1919_v43 = vadd.f32 %v1898_v40, %v1750_v19  ;;  %v2750_v58 = vpop.f32.mrb[81].mxu1  ;;  %v1877_v60 = vpop.f32.mrb[82].mxu0 }
 0x19c   : > { %v1930_v36 = vadd.f32 %v3502_v52, %v1913_v38  ;;  %v1914_v45 = vadd.f32 %v1877_v60, %v3481_v49  ;;  %v1901_v53 = vpop.f32.mrb[82].mxu1  ;;  %v2739_v51 = vpop.f32.mrb[83].mxu0 }
 0x19d   : > { %v1936_v3 = vadd.f32 %v3502_v52, %v1919_v43  ;;  %v1920_v59 = vadd.f32 %v1901_v53, %v1751_v15  ;;  %v2751_v5 = vpop.f32.mrb[83].mxu1  ;;  %v2302_v43 = vunpack.c.h.bf16 %v2312_v33 }
 0x19e   : > { %v1960_v6 = vadd.f32 %v2293_v55, %v1930_v36  ;;  %v1931_v61 = vadd.f32 %v3502_v52, %v1914_v45 }
 0x19f   : > { %v1966_v49 = vadd.f32 %v2305_v57, %v1936_v3  ;;  %v1937_v4 = vadd.f32 %v3502_v52, %v1920_v59 }
 0x1a0   : > { %v1970_v0 = vmax.f32 %v1960_v6, 0.0  ;;  %v1961_v10 = vadd.f32 %v2294_v63, %v1931_v61 }
 0x1a1   : > { %v1976_v17 = vmax.f32 %v1966_v49, 0.0  ;;  %v1967_v2 = vadd.f32 %v2306_v54, %v1937_v4  ;;  %v1882_v18 = vpop.f32.mrb[84].mxu0 }
 0x1a2   : > { %1980 = vst [vmem:[%s3512_s7] sm:$0xff] %v1970_v0  ;;  %v1971_v13 = vmax.f32 %v1961_v10, 0.0  ;;  %v1915_v20 = vadd.f32 %v1882_v18, %v3483_v7  ;;  %v1906_v8 = vpop.f32.mrb[84].mxu1  ;;  %v2742_v12 = vpop.f32.mrb[85].mxu0 }
 0x1a3   : > { %1986 = vst [vmem:[%s3512_s7 + $0x30] sm:$0xff] %v1976_v17  ;;  %v1977_v24 = vmax.f32 %v1967_v2, 0.0  ;;  %v1921_v25 = vadd.f32 %v1906_v8, %v1752_v34  ;;  %v2754_v16 = vpop.f32.mrb[85].mxu1  ;;  %v1885_v30 = vpop.f32.mrb[86].mxu0 }
 0x1a4   : > { %1981 = vst [vmem:[%s3512_s7 + $0x8] sm:$0xff] %v1971_v13  ;;  %v1932_v1 = vadd.f32 %v3502_v52, %v1915_v20  ;;  %v1916_v19 = vadd.f32 %v1885_v30, %v3485_v62  ;;  %v1909_v32 = vpop.f32.mrb[86].mxu1  ;;  %v2743_v35 = vpop.f32.mrb[87].mxu0 }
 0x1a5   : > { %1987 = vst [vmem:[%s3512_s7 + $0x38] sm:$0xff] %v1977_v24  ;;  %v1938_v7 = vadd.f32 %v3502_v52, %v1921_v25  ;;  %v1922_v15 = vadd.f32 %v1909_v32, %v1753_v48  ;;  %v2755_v37 = vpop.f32.mrb[87].mxu1 }
 0x1a6   : > { %v1962_v39 = vadd.f32 %v2297_v21, %v1932_v1  ;;  %v1933_v41 = vadd.f32 %v3502_v52, %v1916_v19 }
 0x1a7   : > { %v1968_v26 = vadd.f32 %v2309_v29, %v1938_v7  ;;  %v1939_v42 = vadd.f32 %v3502_v52, %v1922_v15 }
 0x1a8   : > { %v1972_v62 = vmax.f32 %v1962_v39, 0.0  ;;  %v1963_v34 = vadd.f32 %v2298_v31, %v1933_v41 }
 0x1a9   : > { %v1978_v44 = vmax.f32 %v1968_v26, 0.0  ;;  %v1969_v46 = vadd.f32 %v2310_v23, %v1939_v42  ;;  %v1890_v28 = vpop.f32.mrb[88].mxu0 }
 0x1aa   : > { %1982 = vst [vmem:[%s3512_s7 + $0x10] sm:$0xff] %v1972_v62  ;;  %v1973_v27 = vmax.f32 %v1963_v34, 0.0  ;;  %v1917_v48 = vadd.f32 %v1890_v28, %v3487_v9  ;;  %v2746_v50 = vpop.f32.mrb[89].mxu0 }
 0x1ab   : > { %1988 = vst [vmem:[%s3512_s7 + $0x40] sm:$0xff] %v1978_v44  ;;  %v1979_v38 = vmax.f32 %v1969_v46, 0.0  ;;  %v1893_v55 = vpop.f32.mrb[90].mxu0 }
 0x1ac   : > { %1983 = vst [vmem:[%s3512_s7 + $0x18] sm:$0xff] %v1973_v27  ;;  %v1934_v40 = vadd.f32 %v3502_v52, %v1917_v48  ;;  %v1918_v56 = vadd.f32 %v1893_v55, %v3489_v22  ;;  %v2747_v57 = vpop.f32.mrb[91].mxu0 }
 0x1ad   : > { %1989 = vst [vmem:[%s3512_s7 + $0x48] sm:$0xff] %v1979_v38 }
 0x1ae   : > { %v1964_v58 = vadd.f32 %v2301_v47, %v1934_v40  ;;  %v1935_v60 = vadd.f32 %v3502_v52, %v1918_v56 }
 0x1b0   : > { %v1974_v36 = vmax.f32 %v1964_v58, 0.0  ;;  %v1965_v9 = vadd.f32 %v2302_v43, %v1935_v60 }
 0x1b2   : > { %1984 = vst [vmem:[%s3512_s7 + $0x20] sm:$0xff] %v1974_v36  ;;  %v1975_v45 = vmax.f32 %v1965_v9, 0.0 }
 0x1b4   : > { %1985 = vst [vmem:[%s3512_s7 + $0x28] sm:$0xff] %v1975_v45 }
 0x1b5 PF: > { %s14_s15 = sadd.s32 1, %s2886_s15  }
 0x1b6   : > { %p11_p4 = scmp.ge.s32.totalorder %s14_s15, 4  }
 0x1b8   :  { %13 = sbr.rel (!%p11_p4) target bundleno = 1 (0x1), region = 77 }

</bundles_post_ra>
